<compile_context>
chip_gen: v7x
topology: tpu7x:2x2x1
jax: 0.10.0
libtpu: 0.0.40
codegen_flags: <defaults>
</compile_context>

<pallas_src>
import functools
import math

import jax
import jax.numpy as jnp
from jax import lax
from jax.experimental import pallas as pl
from jax.experimental.pallas import tpu as pltpu


# ---------------------------------------------------------------------------
# Kernel
# ---------------------------------------------------------------------------
def _nabla2_kernel(*refs, dim, n_fields, has_halo):
    """One grid step = (one row tile) x (one input channel).

    refs layout:
      per field: x_ref (1,*lead,TR,W) and, iff has_halo, halo_ref (1,*lead,HR,W)
                 whose first row is the first row of the NEXT row tile
                 (clamped at the bottom of the image);
      then per field: o_ref (dim,*lead,TR,W) -- the `dim` forward differences of
                 this tile (output rows c*dim .. c*dim+dim-1).
    """
    n_in_per_field = 2 if has_halo else 1
    in_refs = refs[: n_in_per_field * n_fields]
    out_refs = refs[n_in_per_field * n_fields:]

    blk = in_refs[0].shape            # (1, *lead, TR, W)
    n_lead = len(blk) - 3
    tr, w = blk[-2], blk[-1]

    # Boundary masks, hoisted out of the per-field / per-direction loops
    # (JAX does not CSE broadcast/iota).
    row_last = (
        lax.broadcasted_iota(jnp.int32, (1,) * n_lead + (tr, 1), n_lead) == tr - 1
    )
    lane_last = None
    if dim == 2:
        lane_last = lax.broadcasted_iota(jnp.int32, (1, w), 1) == w - 1
    if has_halo:
        is_last_row_tile = pl.program_id(0) == pl.num_programs(0) - 1

    for f in range(n_fields):
        x = in_refs[n_in_per_field * f][0]                     # (*lead, TR, W)
        o_ref = out_refs[f]

        eff_halo = None
        if has_halo:
            halo = in_refs[n_in_per_field * f + 1][0]          # (*lead, HR, W)
            halo_row = lax.slice_in_dim(halo, 0, 1, axis=n_lead)
            # Fold the global Neumann row into the tiny (*lead,1,W) halo select:
            # on the last row tile the "next" row becomes the tile's own last
            # row, so the sublane-axis diff is exactly 0 there -- no full-tile
            # boundary select needed on interior (or any) tiles.
            x_last = lax.slice_in_dim(x, tr - 1, tr, axis=n_lead)
            eff_halo = jnp.where(is_last_row_tile, x_last, halo_row)

        for d in range(dim):
            axis = dim - 1 - d        # d = 0 -> last ("x") spatial axis
            if dim == 2 and axis == 1:
                # Lane-axis forward diff: XLU roll + zero the last column.
                rolled = pltpu.roll(x, shift=w - 1, axis=1)   # rolled[:, i] = x[:, (i+1) % w]
                diff = jnp.where(lane_last, jnp.zeros_like(x), rolled - x)
            elif dim == 2 and axis == 0:
                # Sublane-axis forward diff: XLU roll (+ halo splice if tiled).
                rolled = pltpu.roll(x, shift=tr - 1, axis=0)  # rolled[i, :] = x[(i+1) % tr, :]
                if has_halo:
                    shifted = jnp.where(row_last, eff_halo, rolled)
                    diff = shifted - x
                else:
                    diff = jnp.where(row_last, jnp.zeros_like(x), rolled - x)
            elif has_halo and axis == dim - 2:
                # rank>=3 tiled blocks: sublane diff via slice + halo-row concat
                # (Neumann zero already folded into eff_halo).
                shifted = jnp.concatenate(
                    [lax.slice_in_dim(x, 1, tr, axis=axis), eff_halo], axis=axis)
                diff = shifted - x
            else:
                # Lane axis (rank>=3), leading spatial axes, and whole-H sublane
                # axis: clamped-shift concat (boundary diff is 0 because the
                # last slice repeats the last entry).
                n = x.shape[axis]
                shifted = jnp.concatenate(
                    [lax.slice_in_dim(x, 1, n, axis=axis),
                     lax.slice_in_dim(x, n - 1, n, axis=axis)],
                    axis=axis,
                )
                diff = shifted - x
            # Exactly one (lane-dense, full-W) store per output channel.
            o_ref[d] = diff.astype(o_ref.dtype)


# ---------------------------------------------------------------------------
# Tile planning
# ---------------------------------------------------------------------------
def _vmem_capacity_bytes():
    try:
        return int(pltpu.get_tpu_info().vmem_capacity_bytes)
    except Exception:
        # Conservative default (v7x per-TC VMEM); also safe on v5e/v6e.
        return 64 * 1024 * 1024


def _pick_row_tile(h, per_row_bytes, n_fields, dim, quantum, budget_bytes):
    """Largest row tile whose double-buffered working set (input tile + halo +
    dim output channels, per field) fits the VMEM budget.  Whole-H (no halo,
    single grid step per channel) is taken whenever it fits.  Returns None if
    no feasible tiling exists (caller falls back to plain XLA)."""
    def working_set(tr, halo_rows):
        return 2 * n_fields * ((1 + dim) * tr + halo_rows) * per_row_bytes

    if working_set(h, 0) <= budget_bytes:
        return h                       # whole-H: single tile, no halo stream
    if h % quantum != 0:
        return None                    # sublane-unaligned H can't be tiled cleanly
    denom = 2 * n_fields * (1 + dim) * per_row_bytes
    avail = budget_bytes - 2 * n_fields * quantum * per_row_bytes
    if denom <= 0 or avail < denom * quantum:
        return None
    max_t = avail // denom
    best = None
    t = quantum
    while t <= min(max_t, h):
        if h % t == 0:
            best = t
        t += quantum
    return best


# ---------------------------------------------------------------------------
# Wrapper
# ---------------------------------------------------------------------------
def _nabla2_pallas(fields, dim, row_tile=None):
    """Tiled Pallas kernel over one or more real (dim, *spatial) fields.
    Several fields (e.g. real+imag of a complex input) share one pallas_call.
    Returns None if no feasible VMEM tiling exists."""
    x0 = fields[0]
    spatial = x0.shape[1:]
    lead = spatial[:-2]
    n_lead = len(lead)
    h, w = spatial[-2], spatial[-1]
    n_fields = len(fields)
    itemsize = jnp.dtype(x0.dtype).itemsize
    per_row_bytes = math.prod(lead) * w * itemsize
    # dtype-aware sublane quantum: 8 rows for f32, 16 for bf16 (packed sublanes).
    quantum = 8 * max(1, 4 // itemsize)

    capacity = _vmem_capacity_bytes()
    budget = int(capacity * 0.7)

    if row_tile is None:
        tr = _pick_row_tile(h, per_row_bytes, n_fields, dim, quantum, budget)
        if tr is None:
            return None
    else:
        tr = int(row_tile)
        if h % tr != 0 or not (tr % quantum == 0 or tr == h):
            raise ValueError(
                f"row_tile={tr} must divide H={h} and be a multiple of "
                f"{quantum} (or == H)")
    n_r = h // tr
    has_halo = n_r > 1
    hr = quantum                        # halo block rows (sublane aligned)
    zeros_lead = (0,) * n_lead

    def x_index(r, c):
        return (c,) + zeros_lead + (r, 0)

    def o_index(r, c):
        return (c,) + zeros_lead + (r, 0)

    x_block = (1,) + lead + (tr, w)
    o_block = (dim,) + lead + (tr, w)

    in_specs = []
    args = []
    if has_halo:
        halo_stride = tr // hr
        last_halo_block = h // hr - 1
        halo_block = (1,) + lead + (hr, w)

        def halo_index(r, c):
            # first row of the NEXT row tile, clamped at the bottom of the image
            nxt = jnp.minimum((r + 1) * halo_stride, last_halo_block)
            return (c,) + zeros_lead + (nxt, 0)

        for f in fields:
            in_specs.append(pl.BlockSpec(x_block, x_index))
            in_specs.append(pl.BlockSpec(halo_block, halo_index))
            args.extend([f, f])
    else:
        for f in fields:
            in_specs.append(pl.BlockSpec(x_block, x_index))
            args.append(f)

    out_specs = tuple(pl.BlockSpec(o_block, o_index) for _ in fields)
    out_shapes = tuple(
        jax.ShapeDtypeStruct((dim * dim,) + spatial, f.dtype) for f in fields
    )

    # Double-buffered working set actually requested -> explicit scoped-VMEM
    # limit (v5e default is only 16 MiB); leave headroom for compiler scratch.
    halo_rows = hr if has_halo else 0
    ws = 2 * n_fields * ((1 + dim) * tr + halo_rows) * per_row_bytes
    vmem_limit = min(int(capacity * 0.9),
                     max(32 * 1024 * 1024, int(ws * 1.25) + 2 * 1024 * 1024))

    n_elems = math.prod(spatial)
    cost = pl.CostEstimate(
        flops=n_fields * dim * dim * n_elems,
        transcendentals=0,
        bytes_accessed=n_fields * (dim + dim * dim) * n_elems * itemsize,
    )

    kernel = functools.partial(
        _nabla2_kernel, dim=dim, n_fields=n_fields, has_halo=has_halo)
    outs = pl.pallas_call(
        kernel,
        out_shape=out_shapes,
        grid_spec=pltpu.PrefetchScalarGridSpec(
            num_scalar_prefetch=0,
            grid=(n_r, dim),
            in_specs=in_specs,
            out_specs=out_specs,
        ),
        compiler_params=pltpu.CompilerParams(
            dimension_semantics=("parallel", "parallel"),
            vmem_limit_bytes=vmem_limit,
        ),
        cost_estimate=cost,
    )(*args)
    if not isinstance(outs, (tuple, list)):
        outs = (outs,)
    return tuple(outs)


def _use_pallas(dtype, spatial, min_elements=128 * 1024):
    return (
        jnp.dtype(dtype) in (jnp.dtype(jnp.float32), jnp.dtype(jnp.bfloat16))
        and len(spatial) >= 2
        and spatial[-1] >= 128          # lane-dense output stores
        and math.prod(spatial) >= min_elements
    )


def nabla2_reference(x, dim):
    """Pure-JAX reference (same semantics); also the fallback path."""
    outs = []
    for c in range(dim):
        xc = x[c]
        for d in range(dim):
            axis = dim - 1 - d
            n = xc.shape[axis]
            shifted = jnp.concatenate(
                [lax.slice_in_dim(xc, 1, n, axis=axis),
                 lax.slice_in_dim(xc, n - 1, n, axis=axis)],
                axis=axis,
            )
            outs.append(shifted - xc)
    return jnp.stack(outs, axis=0)


def nabla2(x, dim, *, row_tile=None):
    """Pallas equivalent of `Nabla2(dim).forward(x)`.  x: (dim, *spatial)."""
    assert x.ndim == dim + 1 and x.shape[0] == dim, (
        f"expected shape (dim, *spatial) with dim={dim}, got {x.shape}")
    spatial = x.shape[1:]

    if jnp.issubdtype(x.dtype, jnp.complexfloating):
        re, im = jnp.real(x), jnp.imag(x)
        if _use_pallas(re.dtype, spatial):
            # real + imag share a single pallas_call (one pipeline, shared DMA).
            outs = _nabla2_pallas([re, im], dim, row_tile)
            if outs is not None:
                return lax.complex(outs[0], outs[1])
        # TODO(synk): complex128 (float64) has no TPU Pallas path; XLA fallback.
        return nabla2_reference(x, dim)

    if _use_pallas(x.dtype, spatial):
        outs = _nabla2_pallas([x], dim, row_tile)
        if outs is not None:
            return outs[0]
    # TODO(synk): float64 / tiny or lane-sparse (W < 128) inputs use the XLA fallback.
    return nabla2_reference(x, dim)


# ---------------------------------------------------------------------------
# Self-test
# ---------------------------------------------------------------------------
if __name__ == "__main__":
    key = jax.random.PRNGKey(0)
    k2, k3, kc, kci, kb, kt = jax.random.split(key, 6)

    def check(out, ref, atol, msg):
        ok = jnp.allclose(out.astype(jnp.float32) if not jnp.iscomplexobj(out) else out,
                          ref.astype(jnp.float32) if not jnp.iscomplexobj(ref) else ref,
                          atol=atol)
        assert ok, msg

    # dim=2, f32: whole-H single tile (no halo stream), Pallas path.
    x2 = jax.random.normal(k2, (2, 512, 256), dtype=jnp.float32)
    assert _use_pallas(x2.dtype, x2.shape[1:])
    out2 = nabla2(x2, dim=2)
    jax.block_until_ready(out2)
    assert out2.shape == (4, 512, 256)
    check(out2, nabla2_reference(x2, dim=2), 1e-6, "dim=2 whole-H mismatch")

    # dim=2, f32: explicit row tile (exercises the halo splice across 4 tiles).
    out2b = nabla2(x2, dim=2, row_tile=128)
    jax.block_until_ready(out2b)
    check(out2b, nabla2_reference(x2, dim=2), 1e-6, "dim=2 tiled mismatch")

    # dim=3, f32: whole-H volume.
    x3 = jax.random.normal(k3, (3, 8, 128, 128), dtype=jnp.float32)
    assert _use_pallas(x3.dtype, x3.shape[1:])
    out3 = nabla2(x3, dim=3)
    jax.block_until_ready(out3)
    assert out3.shape == (9, 8, 128, 128)
    check(out3, nabla2_reference(x3, dim=3), 1e-6, "dim=3 whole-H mismatch")

    # dim=3, f32: tiled (exercises the rank-3 sublane halo concat path).
    out3b = nabla2(x3, dim=3, row_tile=64)
    jax.block_until_ready(out3b)
    check(out3b, nabla2_reference(x3, dim=3), 1e-6, "dim=3 tiled mismatch")

    # complex64: real + imag go through ONE pallas_call (two in/out streams).
    xc = (jax.random.normal(kc, (2, 512, 256), dtype=jnp.float32)
          + 1j * jax.random.normal(kci, (2, 512, 256), dtype=jnp.float32))
    xc = xc.astype(jnp.complex64)
    outc = nabla2(xc, dim=2)
    jax.block_until_ready(outc)
    assert outc.shape == (4, 512, 256)
    check(outc, nabla2_reference(xc, dim=2), 1e-6, "complex mismatch")

    # bfloat16, tiled with the 16-row sublane quantum (row_tile % 16 == 0).
    xb = jax.random.normal(kb, (2, 512, 256), dtype=jnp.float32).astype(jnp.bfloat16)
    outb = nabla2(xb, dim=2, row_tile=128)
    jax.block_until_ready(outb)
    assert outb.shape == (4, 512, 256)
    check(outb, nabla2_reference(xb, dim=2), 1e-2, "bf16 tiled mismatch")

    # tiny / lane-sparse input: XLA fallback path.
    xt = jax.random.normal(kt, (2, 16, 16), dtype=jnp.float32)
    outt = nabla2(xt, dim=2)
    jax.block_until_ready(outt)
    assert outt.shape == (4, 16, 16)
    check(outt, nabla2_reference(xt, dim=2), 1e-6, "fallback mismatch")

    print("KERNEL_OK")
</pallas_src>

<mosaic_0001>
module attributes {stable_mosaic.version = 11 : i64} {
  func.func @_nabla2_kernel(%arg0: i32, %arg1: i32, %arg2: memref<1x512x256xf32, #tpu.memory_space<vmem>>, %arg3: memref<2x512x256xf32, #tpu.memory_space<vmem>>) attributes {dimension_semantics = [#tpu.dimension_semantics<parallel>, #tpu.dimension_semantics<parallel>], iteration_bounds = array<i64: 1, 2>, scalar_prefetch = 0 : i64, scratch_operands = 0 : i64, tpu.core_type = #tpu.core_type<tc>, window_params = [{transform_indices = @transform_0, window_bounds = array<i64: 1, 512, 256>}, {transform_indices = @transform_1, window_bounds = array<i64: 2, 512, 256>}]} {
    %0 = tpu.iota {dimensions = array<i32: 0>} : vector<512x1xi32>
    %c511_i32 = arith.constant 511 : i32
    %1 = vector.broadcast %c511_i32 : i32 to vector<512x1xi32>
    %2 = arith.cmpi eq, %0, %1 : vector<512x1xi32>
    %3 = tpu.iota {dimensions = array<i32: 1>} : vector<1x256xi32>
    %c255_i32 = arith.constant 255 : i32
    %4 = vector.broadcast %c255_i32 : i32 to vector<1x256xi32>
    %5 = arith.cmpi eq, %3, %4 : vector<1x256xi32>
    %c0 = arith.constant 0 : index
    %c0_0 = arith.constant 0 : index
    %c0_1 = arith.constant 0 : index
    %6 = vector.load %arg2[%c0, %c0_0, %c0_1] : memref<1x512x256xf32, #tpu.memory_space<vmem>>, vector<1x512x256xf32>
    %7 = vector.shape_cast %6 : vector<1x512x256xf32> to vector<512x256xf32>
    %c255_i32_2 = arith.constant 255 : i32
    %8 = tpu.dynamic_rotate %7 by %c255_i32_2 dim 1 : vector<512x256xf32>, i32 -> vector<512x256xf32>
    %cst = arith.constant 0.000000e+00 : f32
    %9 = vector.broadcast %cst : f32 to vector<512x256xf32>
    %10 = arith.subf %8, %7 : vector<512x256xf32>
    %11 = vector.shape_cast %5 : vector<1x256xi1> to vector<1x256xi1>
    %12 = vector.broadcast %11 : vector<1x256xi1> to vector<512x256xi1>
    %13 = arith.select %12, %9, %10 : vector<512x256xi1>, vector<512x256xf32>
    %c0_3 = arith.constant 0 : index
    %c0_4 = arith.constant 0 : index
    %c0_5 = arith.constant 0 : index
    %14 = vector.load %arg3[%c0_3, %c0_4, %c0_5] : memref<2x512x256xf32, #tpu.memory_space<vmem>>, vector<1x512x256xf32>
    %15 = vector.shape_cast %14 : vector<1x512x256xf32> to vector<512x256xf32>
    %16 = vector.shape_cast %13 : vector<512x256xf32> to vector<1x512x256xf32>
    tpu.vector_store %arg3[%c0_3, %c0_4, %c0_5], %16 {strides = array<i32>} : memref<2x512x256xf32, #tpu.memory_space<vmem>>, vector<1x512x256xf32>,
    %c511_i32_6 = arith.constant 511 : i32
    %17 = tpu.dynamic_rotate %7 by %c511_i32_6 dim 0 : vector<512x256xf32>, i32 -> vector<512x256xf32>
    %cst_7 = arith.constant 0.000000e+00 : f32
    %18 = vector.broadcast %cst_7 : f32 to vector<512x256xf32>
    %19 = arith.subf %17, %7 : vector<512x256xf32>
    %20 = vector.shape_cast %2 : vector<512x1xi1> to vector<512x1xi1>
    %21 = vector.broadcast %20 : vector<512x1xi1> to vector<512x256xi1>
    %22 = arith.select %21, %18, %19 : vector<512x256xi1>, vector<512x256xf32>
    %c1 = arith.constant 1 : index
    %c0_8 = arith.constant 0 : index
    %c0_9 = arith.constant 0 : index
    %23 = vector.load %arg3[%c1, %c0_8, %c0_9] : memref<2x512x256xf32, #tpu.memory_space<vmem>>, vector<1x512x256xf32>
    %24 = vector.shape_cast %23 : vector<1x512x256xf32> to vector<512x256xf32>
    %25 = vector.shape_cast %22 : vector<512x256xf32> to vector<1x512x256xf32>
    tpu.vector_store %arg3[%c1, %c0_8, %c0_9], %25 {strides = array<i32>} : memref<2x512x256xf32, #tpu.memory_space<vmem>>, vector<1x512x256xf32>,
    return
  }
  func.func @transform_0(%arg0: i32, %arg1: i32) -> (i32, i32, i32) {
    %c0_i32 = arith.constant 0 : i32
    %c0_i32_0 = arith.constant 0 : i32
    return %arg1, %arg0, %c0_i32 : i32, i32, i32
  }
  func.func @transform_1(%arg0: i32, %arg1: i32) -> (i32, i32, i32) {
    %c0_i32 = arith.constant 0 : i32
    %c0_i32_0 = arith.constant 0 : i32
    return %arg1, %arg0, %c0_i32 : i32, i32, i32
  }
}

</mosaic_0001>

<bundles_post_ra>
// kernel: tpu_custom_call.1
= control target key start
LH: loop header
LB: loop body
LE: loop exit
PB: predicated region body
PF: predicated region fallthrough
CT: control target
= control target key end

     0   :  { %6 = vsyncpa [#allocation3], 0  ;;  %s4899_s0 = inlined_call_operand.hbm [shape: f32[2,512,256], index: 0, kind: input, shape index: {}]   ;;  %s4900_s1 = inlined_call_operand.hbm [shape: f32[4,512,256], index: 1, kind: output, shape index: {}]  }
   0x1   :  { %8 = vsyncpa [#allocation3 + $0x1], 0 }
   0x2   :  { %9 = vsyncpa [#allocation4], 0 }
   0x3   :  { %11 = vsyncpa [#allocation4 + $0x1], 0  ;;  %s2539_s6 = smov 0   ;;  %s2541_s7 = smov 0  }
   0x4   :  { %s2543_s8 = smov 0   ;;  %s2545_s9 = smov 0  }
   0x5   :  { %s2547_s10 = smov 0   ;;  %s2549_s11 = smov 0  }
   0x6 LB: > { %s2067_s12 = sadd.s32 4294967295, %s2520_s11   ;;  %s2068_s13 = sadd.s32 4294967294, %s2520_s11   ;;  %s2520_s11 = sphi %s2549_s11, %s17_s11   ;;  %s2516_s10 = sphi %s2547_s10, %s5033_s10   ;;  %s2512_s9 = sphi %s2545_s9, %s5032_s9   ;;  %s2508_s8 = sphi %s2543_s8, %s5031_s8   ;;  %s2504_s7 = sphi %s2541_s7, %s5030_s7   ;;  %s2500_s6 = sphi %s2539_s6, %s5029_s6  }
   0x7   : > { %s26_s14 = sadd.s32 1, %s2516_s10  ;;  %s38_s15 = sadd.s32 1, %s2508_s8 }
   0x8   : > { %p27_p0 = scmp.ge.s32.totalorder %s26_s14, 2  ;;  %p45_p1 = scmp.ne.s32.totalorder %s2508_s8, %s2504_s7 }
   0x9   : > { %p46_p2 = scmp.eq.s32.totalorder %s2520_s11, 0  ;;  %p51_p3 = scmp.ne.s32.totalorder %s2504_s7, %s2500_s6 }
   0xa   : > { %s5035_s14 = smov (%p27_p0, %s26_s14), 0  ;;  %p52_p5 = scmp.eq.s32.totalorder %s2067_s12, 0 }
   0xb   : > { %p2580_p4 = por %p46_p2, %p45_p1  ;;  %s33_s17 = ssub.s32 %s2516_s10, %s5035_s14 }
   0xc   : > { %p77_p6 = scmp.eq.s32.totalorder %s2067_s12, 1  ;;  %p36_p7 = scmp.eq.s32.totalorder %s33_s17, 0 }
   0xd   : > { %p2586_p8 = por %p52_p5, %p51_p3  ;;  %p83_p10 = scmp.eq.s32.totalorder %s2068_s13, 1 }
   0xe   : > { %p2590_p9 = por %p77_p6, %p45_p1  ;;  %p2226_p13 = scmp.lt.s32.totalorder %s2520_s11, 2 }
   0xf   : > { %s2595_s20 = scalar_select %p36_p7, %s2508_s8, %s38_s15  }
  0x10   : > { %s4944_s19 = scalar_select %p2590_p9, 1, 0 }
  0x11   : > { %p2597_p11 = por %p83_p10, %p51_p3  ;;  %s103_s22 = sand.u32 1, %s2508_s8  }
  0x12   : > { %s2071_s23 = sshll.u32 %s103_s22, 10  ;;  %s2211_s24 = sshll.u32 %s2516_s10, 14 }
  0x13   : > { %s4945_s21 = scalar_select %p2597_p11, 1, 0 }
  0x14   : > { %s2608_s27 = scalar_lea.hbm %s4899_s0, %s2211_s24  ;;  %s107_s28 = scalar_lea.vmem [#allocation2], %s2071_s23 }
  0x15   : > { %s117_s29 = sshll.u32 %s107_s28, 4  ;;  %p2614_p0 = pnand %p2226_p13, %p2580_p4  ;;  %s2610_s29 = int_to_ptr.vmem [resolvable:$true] %s117_s29 }
  0x16   : > { %s2619_s2 = scalar_lea.sflag [#allocation3], %s103_s22  ;;  %s2408_s3 = scalar_lea.hbm %s2608_s27, 16384 }
  0x17   : > { %p2409_p2 = scmp.ne.s32.totalorder %s2608_s27, %s2408_s3  ;;  %p2410_p3 = pneg %p2614_p0 }
  0x18   : > { %s2413_s12 = scalar_lea.hbm %s4899_s0, 32768  ;;  %p2414_p4 = scmp.lt.u32.totalorder %s2608_s27, %s4899_s0 }
  0x19   : > { %p2411_p5 = pnand %p2410_p3, %p2409_p2  ;;  %p2415_p7 = scmp.lt.u32.totalorder %s2413_s12, %s2408_s3 }
  0x1a   : > { %p2417_p13 = scmp.lt.u32.totalorder %s2408_s3, %s2608_s27 }
  0x1b   : > { %p2412_p6 = pneg %p2411_p5  ;;  %p2416_p10 = por %p2415_p7, %p2414_p4 }
  0x1d   : > { %p2418_p12 = por %p2417_p13, %p2416_p10 }
  0x1f   : > { %p2419_p1 = pnand %p2418_p12, %p2412_p6 }
  0x21   : > { %2422 = shalt.err (!%p2419_p1)
}
  0x22   : > { %s2423_s16 = scalar_lea.vmem %s2610_s29, 16384  ;;  %s2522_s17 = smov [#allocation2]  }
  0x23   : > { %p2424_p2 = scmp.ne.s32.totalorder %s2610_s29, %s2423_s16  ;;  %s2428_s22 = sshll.u32 %s2522_s17, 4  ;;  %s2429_s22 = int_to_ptr.vmem [resolvable:$false] %s2428_s22 }
  0x24   : > { %s2430_s23 = scalar_lea.vmem %s2429_s22, 32768  ;;  %p2431_p9 = scmp.lt.s32.totalorder %s2610_s29, %s2429_s22 }
  0x25   : > { %p2426_p5 = pnand %p2424_p2, %p2410_p3  ;;  %p2432_p4 = scmp.lt.s32.totalorder %s2430_s23, %s2423_s16 }
  0x27   : > { %p2427_p11 = pneg %p2426_p5  ;;  %p2433_p7 = por %p2432_p4, %p2431_p9 }
  0x29   : > { %p2434_p10 = pnand %p2433_p7, %p2427_p11 }
  0x2b   : > { %2437 = shalt.err (!%p2434_p10)
}
  0x2c   : > { %s2523_s24 = smov 256   ;;  %s2524_s25 = smov 16  }
  0x2d   : > { %2221 = dma.hbm_to_vmem [thread:$0]  (!%p2614_p0), %s2608_s27, 16384, %s2610_s29, %s2619_s2, %s2523_s24, %s2523_s24, %s2524_s25  }
  0x2e   : > { %p125_p12 = scmp.lt.s32.totalorder %s2520_s11, 3  ;;  %p4947_p1 = scmp.ge.s32.totalorder %s2520_s11, 1 }
  0x30   : > { %p126_p3 = pnand %p4947_p1, %p125_p12 }
  0x32   : > { %129 = sbr.rel (%p126_p3) target bundleno = 454 (0x1c6), region = 24 }
  0x39   : > { %s2651_s26 = sand.u32 1, %s2504_s7  }
  0x3a   : > { %s2075_s28 = sshll.u32 %s2651_s26, 10  ;;  %s132_s3 = scalar_lea.sflag [#allocation3], %s2651_s26 }
  0x3b   : > { %s2655_s4 = scalar_lea.vmem [#allocation2], %s2075_s28 }
  0x3c   : > { %2491 = dma.done.wait (%p2586_p8), %s132_s3, 16384  }
  0x3d   : > { %2493 = vsyncadd (%p2586_p8), %s132_s3, 4294950912  ;;  %v4902_v0 = vlaneseq  ;;  %v295_v2 = vld [vmem:[%s2655_s4 + $0x20] sm:$0xff]  ;;  %v297_v4 = vld [vmem:[%s2655_s4 + $0x30] sm:$0xff]  ;;  %s2525_s18 = smov 127   ;;  %s2076_s27 = sshll.u32 %s2651_s26, 11 }
  0x3e   : > { %v2666_v3 = vld [vmem:[%s2655_s4] sm:$0xff]  ;;  %423 = vrot.lane.b32.xlu1 %v295_v2, %s2525_s18  ;;  %v1196_v5 = vrot.slane %v295_v2, 1  ;;  %v1198_v7 = vrot.slane %v297_v4, 1  ;;  %v293_v8 = vld [vmem:[%s2655_s4 + $0x10] sm:$0xff]  ;;  %s2710_s29 = scalar_lea.vmem [#allocation5], %s2076_s27  ;;  %s2213_s30 = sshll.u32 %s2512_s9, 15 }
  0x3f   : > { %v2662_v1 = vshrl.u32 %v4902_v0, 7  ;;  %419 = vrot.lane.b32.xlu0 %v2666_v3, %s2525_s18  ;;  %v1192_v6 = vrot.slane %v2666_v3, 1  ;;  %v301_v9 = vld [vmem:[%s2655_s4 + $0x50] sm:$0xff]  ;;  %v1194_v10 = vrot.slane %v293_v8, 1  ;;  %v299_v12 = vld [vmem:[%s2655_s4 + $0x40] sm:$0xff]  ;;  %v3282_v0 = vld [vmem:[%s2655_s4 + $0xb8] sm:$0xff]  ;;  %s4840_s12 = scalar_lea.hbm %s4900_s1, %s2213_s30 }
  0x40   : > { %v1202_v11 = vrot.slane %v301_v9, 1  ;;  %v2679_v13 = vld [vmem:[%s2655_s4 + $0x70] sm:$0xff]  ;;  %v2682_v14 = vld [vmem:[%s2655_s4 + $0x60] sm:$0xff]  ;;  %v1200_v17 = vrot.slane %v299_v12, 1  ;;  %4953 = vst [vmem:[#allocation13_spill] sm:$0xff] %v3282_v0  ;;  %s1980_s2 = sshll.u32 %s2710_s29, 4  ;;  %s4842_s2 = int_to_ptr.vmem [resolvable:$true] %s1980_s2 }
  0x41   : > { %vm1320_vm0 = vcmp.lt.s32.totalorder %v2662_v1, 7  ;;  %v2685_v15 = vadd.s32 504, %v2662_v1  ;;  %v1206_v18 = vrot.slane %v2679_v13, 1  ;;  %v1204_v19 = vrot.slane %v2682_v14, 1  ;;  %v2692_v20 = vld [vmem:[%s2655_s4 + $0x90] sm:$0xff]  ;;  %v2702_v25 = vld [vmem:[%s2655_s4 + $0x80] sm:$0xff] }
  0x42   : > { %v1441_v16 = vsel %vm1320_vm0, %v1196_v5, %v1198_v7  ;;  %v1443_v22 = vsel %vm1320_vm0, %v1194_v10, %v1196_v5  ;;  %v1445_v23 = vsel %vm1320_vm0, %v1192_v6, %v1194_v10  ;;  %v1210_v24 = vrot.slane %v2692_v20, 1  ;;  %425 = vrot.lane.b32.xlu1 %v297_v4, %s2525_s18  ;;  %v2725_v38 = vld [vmem:[%s2655_s4 + $0xb0] sm:$0xff]  ;;  %v2728_v39 = vld [vmem:[%s2655_s4 + $0xa0] sm:$0xff]  ;;  %s1963_s13 = scalar_lea.sflag [#allocation4], %s2651_s26  ;;  %s2438_s15 = scalar_lea.vmem %s4842_s2, 32768 }
  0x43   : > { %4948 = vst [vmem:[#allocation8_spill] sm:$0xff] %v2685_v15  ;;  %v1453_v21 = vsub.f32 %v1441_v16, %v295_v2  ;;  %v1451_v26 = vsub.f32 %v1443_v22, %v293_v8  ;;  %421 = vrot.lane.b32.xlu0 %v293_v8, %s2525_s18  ;;  %v1449_v27 = vsub.f32 %v1445_v23, %v2666_v3  ;;  %v1208_v29 = vrot.slane %v2702_v25, 1  ;;  %v2737_v44 = vld [vmem:[%s2655_s4 + $0xd0] sm:$0xff]  ;;  %v2740_v45 = vld [vmem:[%s2655_s4 + $0xc0] sm:$0xff]  ;;  %p2439_p8 = scmp.ne.s32.totalorder %s4842_s2, %s2438_s15  ;;  %p5026_p9 = scmp.ne.s32.totalorder %s4944_s19, 0 }
  0x44   : > { %v1437_v28 = vsel %vm1320_vm0, %v1200_v17, %v1202_v11  ;;  %v1439_v30 = vsel %vm1320_vm0, %v1198_v7, %v1200_v17  ;;  %v1433_v32 = vsel %vm1320_vm0, %v1204_v19, %v1206_v18  ;;  %v1435_v33 = vsel %vm1320_vm0, %v1202_v11, %v1204_v19  ;;  %v2743_v46 = vld [vmem:[%s2655_s4 + $0xf0] sm:$0xff]  ;;  %v2755_v51 = vld [vmem:[%s2655_s4 + $0xe0] sm:$0xff]  ;;  %s2526_s16 = smov [#allocation5]  }
  0x45   : > { %2081 = vst [vmem:[%s2710_s29 + $0x420] sm:$0xff] %v1453_v21  ;;  %v1457_v31 = vsub.f32 %v1437_v28, %v299_v12  ;;  %2079 = vst [vmem:[%s2710_s29 + $0x410] sm:$0xff] %v1451_v26  ;;  %v1455_v34 = vsub.f32 %v1439_v30, %v297_v4  ;;  %v1459_v35 = vsub.f32 %v1435_v33, %v301_v9  ;;  %v1214_v42 = vrot.slane %v2725_v38, 1  ;;  %v2758_v52 = vld [vmem:[%s2655_s4 + $0x110] sm:$0xff]  ;;  %v2775_v61 = vld [vmem:[%s2655_s4 + $0x100] sm:$0xff]  ;;  %p2440_p11 = pnand %p2439_p8, %p5026_p9  ;;  %s2442_s17 = sshll.u32 %s2526_s16, 4  ;;  %s2443_s17 = int_to_ptr.vmem [resolvable:$false] %s2442_s17 }
  0x46   : > { %2077 = vst [vmem:[%s2710_s29 + $0x400] sm:$0xff] %v1449_v27  ;;  %v1461_v36 = vsub.f32 %v1433_v32, %v2682_v14  ;;  %v1429_v37 = vsel %vm1320_vm0, %v1208_v29, %v1210_v24  ;;  %v1431_v40 = vsel %vm1320_vm0, %v1206_v18, %v1208_v29  ;;  %v1212_v43 = vrot.slane %v2728_v39, 1  ;;  %429 = vrot.lane.b32.xlu1 %v301_v9, %s2525_s18  ;;  %v2784_v5 = vld [vmem:[%s2655_s4 + $0x130] sm:$0xff]  ;;  %v2787_v7 = vld [vmem:[%s2655_s4 + $0x120] sm:$0xff]  ;;  %s2444_s22 = scalar_lea.vmem %s2443_s17, 65536  ;;  %p2445_p6 = scmp.lt.s32.totalorder %s4842_s2, %s2443_s17 }
  0x47   : > { %2085 = vst [vmem:[%s2710_s29 + $0x440] sm:$0xff] %v1457_v31  ;;  %v1465_v41 = vsub.f32 %v1429_v37, %v2702_v25  ;;  %2083 = vst [vmem:[%s2710_s29 + $0x430] sm:$0xff] %v1455_v34  ;;  %427 = vrot.lane.b32.xlu0 %v299_v12, %s2525_s18  ;;  %v1463_v47 = vsub.f32 %v1431_v40, %v2679_v13  ;;  %v1218_v48 = vrot.slane %v2737_v44, 1  ;;  %v1216_v49 = vrot.slane %v2740_v45, 1  ;;  %v2790_v8 = vld [vmem:[%s2655_s4 + $0x150] sm:$0xff]  ;;  %p2441_p0 = pneg %p2440_p11  ;;  %p2446_p13 = scmp.lt.s32.totalorder %s2444_s22, %s2438_s15 }
  0x48   : > { %2087 = vst [vmem:[%s2710_s29 + $0x450] sm:$0xff] %v1459_v35  ;;  %2089 = vst [vmem:[%s2710_s29 + $0x460] sm:$0xff] %v1461_v36  ;;  %v1222_v50 = vrot.slane %v2743_v46, 1  ;;  %v1425_v53 = vsel %vm1320_vm0, %v1212_v43, %v1214_v42  ;;  %v1427_v54 = vsel %vm1320_vm0, %v1210_v24, %v1212_v43  ;;  %v1220_v55 = vrot.slane %v2755_v51, 1  ;;  %v2803_v16 = vld [vmem:[%s2655_s4 + $0x140] sm:$0xff]  ;;  %v2818_v22 = vld [vmem:[%s2655_s4 + $0x190] sm:$0xff] }
  0x49   : > { %2093 = vst [vmem:[%s2710_s29 + $0x480] sm:$0xff] %v1465_v41  ;;  %v1226_v56 = vrot.slane %v2758_v52, 1  ;;  %2091 = vst [vmem:[%s2710_s29 + $0x470] sm:$0xff] %v1463_v47  ;;  %v1467_v57 = vsub.f32 %v1427_v54, %v2692_v20  ;;  %v1469_v58 = vsub.f32 %v1425_v53, %v2728_v39  ;;  %v1421_v59 = vsel %vm1320_vm0, %v1216_v49, %v1218_v48  ;;  %v2815_v21 = vld [vmem:[%s2655_s4 + $0x160] sm:$0xff]  ;;  %p2447_p2 = por %p2446_p13, %p2445_p6 }
  0x4a   : > { %v1423_v60 = vsel %vm1320_vm0, %v1214_v42, %v1216_v49  ;;  %v1473_v63 = vsub.f32 %v1421_v59, %v2740_v45  ;;  %v1417_v2 = vsel %vm1320_vm0, %v1220_v55, %v1222_v50  ;;  %v1419_v4 = vsel %vm1320_vm0, %v1218_v48, %v1220_v55  ;;  %433 = vrot.lane.b32.xlu1 %v2679_v13, %s2525_s18  ;;  %v2806_v13 = vld [vmem:[%s2655_s4 + $0x170] sm:$0xff]  ;;  %v2835_v32 = vld [vmem:[%s2655_s4 + $0x180] sm:$0xff] }
  0x4b   : > { %v1471_v62 = vsub.f32 %v1423_v60, %v2725_v38  ;;  %431 = vrot.lane.b32.xlu0 %v2682_v14, %s2525_s18  ;;  %2095 = vst [vmem:[%s2710_s29 + $0x490] sm:$0xff] %v1467_v57  ;;  %2097 = vst [vmem:[%s2710_s29 + $0x4a0] sm:$0xff] %v1469_v58  ;;  %v1475_v9 = vsub.f32 %v1419_v4, %v2737_v44  ;;  %v1477_v10 = vsub.f32 %v1417_v2, %v2755_v51  ;;  %v2863_v48 = vld [vmem:[%s2655_s4 + $0x1b0] sm:$0xff]  ;;  %p2448_p5 = pnand %p2447_p2, %p2441_p0 }
  0x4c   : > { %v1224_v11 = vrot.slane %v2775_v61, 1  ;;  %v1230_v12 = vrot.slane %v2784_v5, 1  ;;  %2101 = vst [vmem:[%s2710_s29 + $0x4c0] sm:$0xff] %v1473_v63  ;;  %v1228_v14 = vrot.slane %v2787_v7, 1  ;;  %v1234_v17 = vrot.slane %v2790_v8, 1  ;;  %v2866_v49 = vld [vmem:[%s2655_s4 + $0x1a0] sm:$0xff] }
  0x4d   : > { %2099 = vst [vmem:[%s2710_s29 + $0x4b0] sm:$0xff] %v1471_v62  ;;  %v1232_v18 = vrot.slane %v2803_v16, 1  ;;  %v1238_v19 = vrot.slane %v2806_v13, 1  ;;  %2103 = vst [vmem:[%s2710_s29 + $0x4d0] sm:$0xff] %v1475_v9  ;;  %v1236_v26 = vrot.slane %v2815_v21, 1  ;;  %v1242_v27 = vrot.slane %v2818_v22, 1 }
  0x4e   : > { %2105 = vst [vmem:[%s2710_s29 + $0x4e0] sm:$0xff] %v1477_v10  ;;  %v1413_v23 = vsel %vm1320_vm0, %v1224_v11, %v1226_v56  ;;  %v1415_v24 = vsel %vm1320_vm0, %v1222_v50, %v1224_v11  ;;  %v1409_v30 = vsel %vm1320_vm0, %v1228_v14, %v1230_v12  ;;  %v1411_v31 = vsel %vm1320_vm0, %v1226_v56, %v1228_v14  ;;  %v2875_v56 = vld [vmem:[%s2655_s4 + $0x1d0] sm:$0xff]  ;;  %v2878_v57 = vld [vmem:[%s2655_s4 + $0x1c0] sm:$0xff] }
  0x4f   : > { %v1479_v28 = vsub.f32 %v1415_v24, %v2743_v46  ;;  %v1481_v29 = vsub.f32 %v1413_v23, %v2775_v61  ;;  %437 = vrot.lane.b32.xlu1 %v2692_v20, %s2525_s18  ;;  %435 = vrot.lane.b32.xlu0 %v2702_v25, %s2525_s18  ;;  %v1483_v33 = vsub.f32 %v1411_v31, %v2758_v52  ;;  %v1240_v36 = vrot.slane %v2835_v32, 1  ;;  %v2881_v58 = vld [vmem:[%s2655_s4 + $0x1f0] sm:$0xff]  ;;  %v2895_v2 = vld [vmem:[%s2655_s4 + $0x1e0] sm:$0xff] }
  0x50   : > { %v1485_v34 = vsub.f32 %v1409_v30, %v2787_v7  ;;  %v1405_v35 = vsel %vm1320_vm0, %v1232_v18, %v1234_v17  ;;  %v1407_v20 = vsel %vm1320_vm0, %v1230_v12, %v1232_v18  ;;  %v1401_v25 = vsel %vm1320_vm0, %v1236_v26, %v1238_v19  ;;  %v2898_v4 = vld [vmem:[%s2655_s4 + $0x210] sm:$0xff]  ;;  %v2915_v18 = vld [vmem:[%s2655_s4 + $0x200] sm:$0xff] }
  0x51   : > { %2107 = vst [vmem:[%s2710_s29 + $0x4f0] sm:$0xff] %v1479_v28  ;;  %2109 = vst [vmem:[%s2710_s29 + $0x500] sm:$0xff] %v1481_v29  ;;  %v1489_v37 = vsub.f32 %v1405_v35, %v2803_v16  ;;  %v1403_v40 = vsel %vm1320_vm0, %v1234_v17, %v1236_v26  ;;  %v1487_v41 = vsub.f32 %v1407_v20, %v2784_v5  ;;  %v1246_v54 = vrot.slane %v2863_v48, 1  ;;  %v2927_v28 = vld [vmem:[%s2655_s4 + $0x220] sm:$0xff]  ;;  %v2930_v29 = vld [vmem:[%s2655_s4 + $0x250] sm:$0xff] }
  0x52   : > { %2111 = vst [vmem:[%s2710_s29 + $0x510] sm:$0xff] %v1483_v33  ;;  %2113 = vst [vmem:[%s2710_s29 + $0x520] sm:$0xff] %v1485_v34  ;;  %v1491_v42 = vsub.f32 %v1403_v40, %v2790_v8  ;;  %v1493_v43 = vsub.f32 %v1401_v25, %v2815_v21  ;;  %v1397_v47 = vsel %vm1320_vm0, %v1240_v36, %v1242_v27  ;;  %v1244_v55 = vrot.slane %v2866_v49, 1  ;;  %v2943_v35 = vld [vmem:[%s2655_s4 + $0x240] sm:$0xff]  ;;  %v2958_v40 = vld [vmem:[%s2655_s4 + $0x290] sm:$0xff] }
  0x53   : > { %2117 = vst [vmem:[%s2710_s29 + $0x540] sm:$0xff] %v1489_v37  ;;  %v1399_v50 = vsel %vm1320_vm0, %v1238_v19, %v1240_v36  ;;  %v1497_v53 = vsub.f32 %v1397_v47, %v2835_v32  ;;  %441 = vrot.lane.b32.xlu1 %v2725_v38, %s2525_s18  ;;  %439 = vrot.lane.b32.xlu0 %v2728_v39, %s2525_s18  ;;  %2115 = vst [vmem:[%s2710_s29 + $0x530] sm:$0xff] %v1487_v41  ;;  %v1250_v60 = vrot.slane %v2875_v56, 1 }
  0x54   : > { %2119 = vst [vmem:[%s2710_s29 + $0x550] sm:$0xff] %v1491_v42  ;;  %2121 = vst [vmem:[%s2710_s29 + $0x560] sm:$0xff] %v1493_v43  ;;  %v1495_v59 = vsub.f32 %v1399_v50, %v2806_v13  ;;  %v1248_v62 = vrot.slane %v2878_v57, 1  ;;  %v1254_v63 = vrot.slane %v2881_v58, 1  ;;  %v1393_v38 = vsel %vm1320_vm0, %v1244_v55, %v1246_v54  ;;  %v2955_v25 = vld [vmem:[%s2655_s4 + $0x260] sm:$0xff] }
  0x55   : > { %2125 = vst [vmem:[%s2710_s29 + $0x580] sm:$0xff] %v1497_v53  ;;  %v1395_v39 = vsel %vm1320_vm0, %v1242_v27, %v1244_v55  ;;  %v1252_v9 = vrot.slane %v2895_v2, 1  ;;  %v1258_v10 = vrot.slane %v2898_v4, 1  ;;  %v1501_v12 = vsub.f32 %v1393_v38, %v2866_v49  ;;  %v2924_v27 = vld [vmem:[%s2655_s4 + $0x230] sm:$0xff] }
  0x56   : > { %2123 = vst [vmem:[%s2710_s29 + $0x570] sm:$0xff] %v1495_v59  ;;  %v1499_v11 = vsub.f32 %v1395_v39, %v2818_v22  ;;  %v1389_v14 = vsel %vm1320_vm0, %v1248_v62, %v1250_v60  ;;  %v1391_v17 = vsel %vm1320_vm0, %v1246_v54, %v1248_v62  ;;  %v1256_v33 = vrot.slane %v2915_v18, 1  ;;  %v2975_v59 = vld [vmem:[%s2655_s4 + $0x280] sm:$0xff] }
  0x57   : > { %v1503_v19 = vsub.f32 %v1391_v17, %v2863_v48  ;;  %v1505_v23 = vsub.f32 %v1389_v14, %v2878_v57  ;;  %v1385_v24 = vsel %vm1320_vm0, %v1252_v9, %v1254_v63  ;;  %v1387_v26 = vsel %vm1320_vm0, %v1250_v60, %v1252_v9  ;;  %445 = vrot.lane.b32.xlu1 %v2737_v44, %s2525_s18  ;;  %v2946_v44 = vld [vmem:[%s2655_s4 + $0x270] sm:$0xff] }
  0x58   : > { %443 = vrot.lane.b32.xlu0 %v2740_v45, %s2525_s18  ;;  %2127 = vst [vmem:[%s2710_s29 + $0x590] sm:$0xff] %v1499_v11  ;;  %2129 = vst [vmem:[%s2710_s29 + $0x5a0] sm:$0xff] %v1501_v12  ;;  %v1507_v30 = vsub.f32 %v1387_v26, %v2875_v56  ;;  %v1509_v31 = vsub.f32 %v1385_v24, %v2895_v2  ;;  %v1262_v34 = vrot.slane %v2924_v27, 1  ;;  %v1260_v45 = vrot.slane %v2927_v28, 1  ;;  %v3003_v17 = vld [vmem:[%s2655_s4 + $0x2b0] sm:$0xff] }
  0x59   : > { %2131 = vst [vmem:[%s2710_s29 + $0x5b0] sm:$0xff] %v1503_v19  ;;  %2133 = vst [vmem:[%s2710_s29 + $0x5c0] sm:$0xff] %v1505_v23  ;;  %v1266_v36 = vrot.slane %v2930_v29, 1  ;;  %v1264_v20 = vrot.slane %v2943_v35, 1  ;;  %v1270_v37 = vrot.slane %v2946_v44, 1  ;;  %v1381_v41 = vsel %vm1320_vm0, %v1256_v33, %v1258_v10  ;;  %v3006_v19 = vld [vmem:[%s2655_s4 + $0x2a0] sm:$0xff] }
  0x5a   : > { %2135 = vst [vmem:[%s2710_s29 + $0x5d0] sm:$0xff] %v1507_v30  ;;  %2137 = vst [vmem:[%s2710_s29 + $0x5e0] sm:$0xff] %v1509_v31  ;;  %v1383_v42 = vsel %vm1320_vm0, %v1254_v63, %v1256_v33  ;;  %v1268_v43 = vrot.slane %v2955_v25, 1  ;;  %v1274_v47 = vrot.slane %v2958_v40, 1  ;;  %v1513_v53 = vsub.f32 %v1381_v41, %v2915_v18  ;;  %v3015_v31 = vld [vmem:[%s2655_s4 + $0x2d0] sm:$0xff]  ;;  %v3018_v33 = vld [vmem:[%s2655_s4 + $0x2c0] sm:$0xff] }
  0x5b   : > { %v1511_v50 = vsub.f32 %v1383_v42, %v2881_v58  ;;  %v1377_v54 = vsel %vm1320_vm0, %v1260_v45, %v1262_v34  ;;  %v1379_v55 = vsel %vm1320_vm0, %v1258_v10, %v1260_v45  ;;  %449 = vrot.lane.b32.xlu1 %v2743_v46, %s2525_s18  ;;  %v1373_v63 = vsel %vm1320_vm0, %v1264_v20, %v1266_v36  ;;  %v3035_v41 = vld [vmem:[%s2655_s4 + $0x2e0] sm:$0xff]  ;;  %v3038_v42 = vld [vmem:[%s2655_s4 + $0x310] sm:$0xff] }
  0x5c   : > { %447 = vrot.lane.b32.xlu0 %v2755_v51, %s2525_s18  ;;  %v1515_v60 = vsub.f32 %v1379_v55, %v2898_v4  ;;  %v1517_v62 = vsub.f32 %v1377_v54, %v2927_v28  ;;  %v1272_v38 = vrot.slane %v2975_v59, 1  ;;  %2141 = vst [vmem:[%s2710_s29 + $0x600] sm:$0xff] %v1513_v53  ;;  %v1375_v46 = vsel %vm1320_vm0, %v1262_v34, %v1264_v20  ;;  %v3021_v34 = vld [vmem:[%s2655_s4 + $0x2f0] sm:$0xff] }
  0x5d   : > { %2139 = vst [vmem:[%s2710_s29 + $0x5f0] sm:$0xff] %v1511_v50  ;;  %v1521_v39 = vsub.f32 %v1373_v63, %v2943_v35  ;;  %v1369_v51 = vsel %vm1320_vm0, %v1268_v43, %v1270_v37  ;;  %v1371_v9 = vsel %vm1320_vm0, %v1266_v36, %v1268_v43  ;;  %v1519_v10 = vsub.f32 %v1375_v46, %v2924_v27 }
  0x5e   : > { %2143 = vst [vmem:[%s2710_s29 + $0x610] sm:$0xff] %v1515_v60  ;;  %2145 = vst [vmem:[%s2710_s29 + $0x620] sm:$0xff] %v1517_v62  ;;  %v1523_v11 = vsub.f32 %v1371_v9, %v2930_v29  ;;  %v1525_v12 = vsub.f32 %v1369_v51, %v2955_v25  ;;  %v1365_v14 = vsel %vm1320_vm0, %v1272_v38, %v1274_v47  ;;  %v1278_v26 = vrot.slane %v3003_v17, 1  ;;  %v3055_v62 = vld [vmem:[%s2655_s4 + $0x300] sm:$0xff]  ;;  %v3070_v9 = vld [vmem:[%s2655_s4 + $0x350] sm:$0xff] }
  0x5f   : > { %2149 = vst [vmem:[%s2710_s29 + $0x640] sm:$0xff] %v1521_v39  ;;  %v1367_v23 = vsel %vm1320_vm0, %v1270_v37, %v1272_v38  ;;  %v1529_v24 = vsub.f32 %v1365_v14, %v2975_v59  ;;  %v1276_v30 = vrot.slane %v3006_v19, 1  ;;  %453 = vrot.lane.b32.xlu1 %v2758_v52, %s2525_s18  ;;  %2147 = vst [vmem:[%s2710_s29 + $0x630] sm:$0xff] %v1519_v10  ;;  %v1282_v36 = vrot.slane %v3015_v31, 1  ;;  %v3064_v39 = vld [vmem:[%s2655_s4 + $0x330] sm:$0xff] }
  0x60   : > { %451 = vrot.lane.b32.xlu0 %v2775_v61, %s2525_s18  ;;  %2151 = vst [vmem:[%s2710_s29 + $0x650] sm:$0xff] %v1523_v11  ;;  %2153 = vst [vmem:[%s2710_s29 + $0x660] sm:$0xff] %v1525_v12  ;;  %v1527_v45 = vsub.f32 %v1367_v23, %v2946_v44  ;;  %v1280_v20 = vrot.slane %v3018_v33, 1  ;;  %v1286_v37 = vrot.slane %v3021_v34, 1  ;;  %v1284_v43 = vrot.slane %v3035_v41, 1  ;;  %v3067_v51 = vld [vmem:[%s2655_s4 + $0x320] sm:$0xff] }
  0x61   : > { %2157 = vst [vmem:[%s2710_s29 + $0x680] sm:$0xff] %v1529_v24  ;;  %v1361_v52 = vsel %vm1320_vm0, %v1276_v30, %v1278_v26  ;;  %v1363_v61 = vsel %vm1320_vm0, %v1274_v47, %v1276_v30  ;;  %v1290_v50 = vrot.slane %v3038_v42, 1  ;;  %v1288_v12 = vrot.slane %v3055_v62, 1  ;;  %v3083_v23 = vld [vmem:[%s2655_s4 + $0x340] sm:$0xff] }
  0x62   : > { %2155 = vst [vmem:[%s2710_s29 + $0x670] sm:$0xff] %v1527_v45  ;;  %v1531_v53 = vsub.f32 %v1363_v61, %v2958_v40  ;;  %v1533_v54 = vsub.f32 %v1361_v52, %v3006_v19  ;;  %v1357_v55 = vsel %vm1320_vm0, %v1280_v20, %v1282_v36  ;;  %v1359_v60 = vsel %vm1320_vm0, %v1278_v26, %v1280_v20  ;;  %v3095_v45 = vld [vmem:[%s2655_s4 + $0x360] sm:$0xff] }
  0x63   : > { %v1535_v47 = vsub.f32 %v1359_v60, %v3003_v17  ;;  %v1537_v63 = vsub.f32 %v1357_v55, %v3018_v33  ;;  %v1353_v38 = vsel %vm1320_vm0, %v1284_v43, %v1286_v37  ;;  %v1355_v46 = vsel %vm1320_vm0, %v1282_v36, %v1284_v43  ;;  %457 = vrot.lane.b32.xlu1 %v2784_v5, %s2525_s18  ;;  %v3086_v5 = vld [vmem:[%s2655_s4 + $0x370] sm:$0xff] }
  0x64   : > { %455 = vrot.lane.b32.xlu0 %v2787_v7, %s2525_s18  ;;  %2159 = vst [vmem:[%s2710_s29 + $0x690] sm:$0xff] %v1531_v53  ;;  %2161 = vst [vmem:[%s2710_s29 + $0x6a0] sm:$0xff] %v1533_v54  ;;  %v1539_v10 = vsub.f32 %v1355_v46, %v3015_v31  ;;  %v1541_v11 = vsub.f32 %v1353_v38, %v3035_v41  ;;  %v1294_v14 = vrot.slane %v3064_v39, 1  ;;  %v1292_v7 = vrot.slane %v3067_v51, 1  ;;  %v3098_v36 = vld [vmem:[%s2655_s4 + $0x390] sm:$0xff] }
  0x65   : > { %2163 = vst [vmem:[%s2710_s29 + $0x6b0] sm:$0xff] %v1535_v47  ;;  %2165 = vst [vmem:[%s2710_s29 + $0x6c0] sm:$0xff] %v1537_v63  ;;  %v1298_v24 = vrot.slane %v3070_v9, 1  ;;  %v1296_v26 = vrot.slane %v3083_v23, 1  ;;  %v1302_v30 = vrot.slane %v3086_v5, 1  ;;  %v1349_v20 = vsel %vm1320_vm0, %v1288_v12, %v1290_v50  ;;  %v3115_v47 = vld [vmem:[%s2655_s4 + $0x380] sm:$0xff] }
  0x66   : > { %2167 = vst [vmem:[%s2710_s29 + $0x6d0] sm:$0xff] %v1539_v10  ;;  %2169 = vst [vmem:[%s2710_s29 + $0x6e0] sm:$0xff] %v1541_v11  ;;  %v1351_v52 = vsel %vm1320_vm0, %v1286_v37, %v1288_v12  ;;  %v1300_v61 = vrot.slane %v3095_v45, 1  ;;  %v1306_v43 = vrot.slane %v3098_v36, 1  ;;  %v1545_v54 = vsub.f32 %v1349_v20, %v3055_v62  ;;  %v3147_v20 = vld [vmem:[%s2655_s4 + $0x3a0] sm:$0xff] }
  0x67   : > { %v1543_v53 = vsub.f32 %v1351_v52, %v3021_v34  ;;  %v1345_v55 = vsel %vm1320_vm0, %v1292_v7, %v1294_v14  ;;  %v1347_v60 = vsel %vm1320_vm0, %v1290_v50, %v1292_v7  ;;  %vm285_vm1 = vcmp.eq.s32.totalorder %v2685_v15, 511  ;;  %461 = vrot.lane.b32.xlu1 %v2790_v8, %s2525_s18 }
  0x68   : > { %459 = vrot.lane.b32.xlu0 %v2803_v16, %s2525_s18  ;;  %v1547_v37 = vsub.f32 %v1347_v60, %v3038_v42  ;;  %v1549_v63 = vsub.f32 %v1345_v55, %v3067_v51  ;;  %v1341_v50 = vsel %vm1320_vm0, %v1296_v26, %v1298_v24  ;;  %v1304_v38 = vrot.slane %v3115_v47, 1  ;;  %2173 = vst [vmem:[%s2710_s29 + $0x700] sm:$0xff] %v1545_v54  ;;  %v3156_v54 = vld [vmem:[%s2655_s4 + $0x3d0] sm:$0xff]  ;;  %v3159_v55 = vld [vmem:[%s2655_s4 + $0x3c0] sm:$0xff] }
  0x69   : > { %2171 = vst [vmem:[%s2710_s29 + $0x6f0] sm:$0xff] %v1543_v53  ;;  %v1343_v8 = vsel %vm1320_vm0, %v1294_v14, %v1296_v26  ;;  %v1553_v46 = vsub.f32 %v1341_v50, %v3083_v23  ;;  %v1337_v16 = vsel %vm1320_vm0, %v1300_v61, %v1302_v30  ;;  %v1339_v10 = vsel %vm1320_vm0, %v1298_v24, %v1300_v61  ;;  %v3144_v26 = vld [vmem:[%s2655_s4 + $0x3b0] sm:$0xff] }
  0x6a   : > { %2175 = vst [vmem:[%s2710_s29 + $0x710] sm:$0xff] %v1547_v37  ;;  %2177 = vst [vmem:[%s2710_s29 + $0x720] sm:$0xff] %v1549_v63  ;;  %v1551_v11 = vsub.f32 %v1343_v8, %v3064_v39  ;;  %v1555_v12 = vsub.f32 %v1339_v10, %v3070_v9  ;;  %v1557_v14 = vsub.f32 %v1337_v16, %v3095_v45  ;;  %v1310_v61 = vrot.slane %v3144_v26, 1  ;;  %v3162_v60 = vld [vmem:[%s2655_s4 + $0x3f0] sm:$0xff]  ;;  %v3179_v8 = vld [vmem:[%s2655_s4 + $0x18] sm:$0xff] }
  0x6b   : > { %v1333_v7 = vsel %vm1320_vm0, %v1304_v38, %v1306_v43  ;;  %2181 = vst [vmem:[%s2710_s29 + $0x740] sm:$0xff] %v1553_v46  ;;  %v1335_v24 = vsel %vm1320_vm0, %v1302_v30, %v1304_v38  ;;  %v1308_v53 = vrot.slane %v3147_v20, 1  ;;  %465 = vrot.lane.b32.xlu1 %v2806_v13, %s2525_s18  ;;  %v1314_v37 = vrot.slane %v3156_v54, 1  ;;  %v3176_v38 = vld [vmem:[%s2655_s4 + $0x3e0] sm:$0xff] }
  0x6c   : > { %v1561_v52 = vsub.f32 %v1333_v7, %v3115_v47  ;;  %463 = vrot.lane.b32.xlu0 %v2815_v21, %s2525_s18  ;;  %2179 = vst [vmem:[%s2710_s29 + $0x730] sm:$0xff] %v1551_v11  ;;  %2183 = vst [vmem:[%s2710_s29 + $0x750] sm:$0xff] %v1555_v12  ;;  %v1559_v30 = vsub.f32 %v1335_v24, %v3086_v5  ;;  %v1312_v63 = vrot.slane %v3159_v55, 1  ;;  %v1318_v50 = vrot.slane %v3162_v60, 1 }
  0x6d   : > { %2185 = vst [vmem:[%s2710_s29 + $0x760] sm:$0xff] %v1557_v14  ;;  %v1329_v13 = vsel %vm1320_vm0, %v1308_v53, %v1310_v61  ;;  %v1331_v21 = vsel %vm1320_vm0, %v1306_v43, %v1308_v53  ;;  %v1316_v46 = vrot.slane %v3176_v38, 1  ;;  %v1195_v16 = vrot.slane %v3179_v8, 1  ;;  %v3204_v53 = vld [vmem:[%s2655_s4 + $0x8] sm:$0xff] }
  0x6e   : > { %2189 = vst [vmem:[%s2710_s29 + $0x780] sm:$0xff] %v1561_v52  ;;  %2187 = vst [vmem:[%s2710_s29 + $0x770] sm:$0xff] %v1559_v30  ;;  %v1563_v10 = vsub.f32 %v1331_v21, %v3098_v36  ;;  %v1565_v11 = vsub.f32 %v1329_v13, %v3147_v20  ;;  %v1325_v12 = vsel %vm1320_vm0, %v1312_v63, %v1314_v37  ;;  %v3207_v30 = vld [vmem:[%s2655_s4 + $0x38] sm:$0xff] }
  0x6f   : > { %v1327_v14 = vsel %vm1320_vm0, %v1310_v61, %v1312_v63  ;;  %v1569_v7 = vsub.f32 %v1325_v12, %v3159_v55  ;;  %v1447_v24 = vsel %vm1320_vm0, %v1318_v50, %v1192_v6  ;;  %v1321_v52 = vsel %vm1320_vm0, %v1316_v46, %v1318_v50  ;;  %469 = vrot.lane.b32.xlu1 %v2818_v22, %s2525_s18  ;;  %v3221_v50 = vld [vmem:[%s2655_s4 + $0x28] sm:$0xff]  ;;  %v3224_v22 = vld [vmem:[%s2655_s4 + $0x58] sm:$0xff] }
  0x70   : > { %v1567_v43 = vsub.f32 %v1327_v14, %v3144_v26  ;;  %467 = vrot.lane.b32.xlu0 %v2835_v32, %s2525_s18  ;;  %2191 = vst [vmem:[%s2710_s29 + $0x790] sm:$0xff] %v1563_v10  ;;  %2193 = vst [vmem:[%s2710_s29 + $0x7a0] sm:$0xff] %v1565_v11  ;;  %v1575_v3 = vsub.f32 %v1447_v24, %v3162_v60  ;;  %v1323_v6 = vsel %vm1320_vm0, %v1314_v37, %v1316_v46  ;;  %v3233_v46 = vld [vmem:[%s2655_s4 + $0x48] sm:$0xff] }
  0x71   : > { %v1573_v61 = vsub.f32 %v1321_v52, %v3176_v38  ;;  %v4903_v63 = vrot.slane %v3204_v53, 1  ;;  %4949 = vst [vmem:[#allocation9_spill] sm:$0xff] %v3224_v22  ;;  %2197 = vst [vmem:[%s2710_s29 + $0x7c0] sm:$0xff] %v1569_v7  ;;  %v1571_v32 = vsub.f32 %v1323_v6, %v3156_v54  ;;  %v1199_v13 = vrot.slane %v3207_v30, 1  ;;  %v3236_v10 = vld [vmem:[%s2655_s4 + $0x78] sm:$0xff]  ;;  %v3248_v7 = vld [vmem:[%s2655_s4 + $0x68] sm:$0xff] }
  0x72   : > { %2195 = vst [vmem:[%s2710_s29 + $0x7b0] sm:$0xff] %v1567_v43  ;;  %v1197_v21 = vrot.slane %v3221_v50, 1  ;;  %v1203_v37 = vrot.slane %v3224_v22, 1  ;;  %4950 = vst [vmem:[#allocation10_spill] sm:$0xff] %v3233_v46  ;;  %v1831_v11 = vsel %vm285_vm1, 0.0, %v1575_v3  ;;  %v1201_v14 = vrot.slane %v3233_v46, 1 }
  0x73   : > { %2201 = vst [vmem:[%s2710_s29 + $0x7e0] sm:$0xff] %v1573_v61  ;;  %v1446_v12 = vsel %vm1320_vm0, %v4903_v63, %v1195_v16  ;;  %v1207_v43 = vrot.slane %v3236_v10, 1  ;;  %4951 = vst [vmem:[#allocation11_spill] sm:$0xff] %v3248_v7  ;;  %v1205_v6 = vrot.slane %v3248_v7, 1  ;;  %v3259_v61 = vld [vmem:[%s2655_s4 + $0x98] sm:$0xff]  ;;  %473 = vrot.lane.b32.xlu1 %v2863_v48, %s2525_s18  ;;  %v3297_v63 = vld [vmem:[%s2655_s4 + $0xc8] sm:$0xff] }
  0x74   : > { %2203 = vst [vmem:[%s2710_s29 + $0x7f0] sm:$0xff] %v1831_v11  ;;  %2199 = vst [vmem:[%s2710_s29 + $0x7d0] sm:$0xff] %v1571_v32  ;;  %v1450_v24 = vsub.f32 %v1446_v12, %v3204_v53  ;;  %v1442_v52 = vsel %vm1320_vm0, %v1197_v21, %v1199_v13  ;;  %v1444_v3 = vsel %vm1320_vm0, %v1195_v16, %v1197_v21  ;;  %471 = vrot.lane.b32.xlu0 %v2866_v49, %s2525_s18 }
  0x75   : > { %v1452_v32 = vsub.f32 %v1444_v3, %v3179_v8  ;;  %v1454_v11 = vsub.f32 %v1442_v52, %v3221_v50  ;;  %v1438_v16 = vsel %vm1320_vm0, %v1201_v14, %v1203_v37  ;;  %v1211_v21 = vrot.slane %v3259_v61, 1  ;;  %v3279_v3 = vld [vmem:[%s2655_s4 + $0x88] sm:$0xff]  ;;  %4956 = vst [vmem:[#allocation16_spill] sm:$0xff] %v3297_v63 }
  0x76   : > { %2078 = vst [vmem:[%s2710_s29 + $0x408] sm:$0xff] %v1450_v24  ;;  %v1440_v48 = vsel %vm1320_vm0, %v1199_v13, %v1201_v14  ;;  %v1458_v12 = vsub.f32 %v1438_v16, %v3233_v46  ;;  %v1434_v49 = vsel %vm1320_vm0, %v1205_v6, %v1207_v43  ;;  %v1436_v52 = vsel %vm1320_vm0, %v1203_v37, %v1205_v6  ;;  %v3291_v37 = vld [vmem:[%s2655_s4 + $0xa8] sm:$0xff]  ;;  %v3294_v6 = vld [vmem:[%s2655_s4 + $0xd8] sm:$0xff] }
  0x77   : > { %4952 = vst [vmem:[#allocation12_spill] sm:$0xff] %v3279_v3  ;;  %2080 = vst [vmem:[%s2710_s29 + $0x418] sm:$0xff] %v1452_v32  ;;  %v1456_v24 = vsub.f32 %v1440_v48, %v3207_v30  ;;  %v1460_v13 = vsub.f32 %v1436_v52, %v3224_v22  ;;  %v1462_v14 = vsub.f32 %v1434_v49, %v3248_v7  ;;  %v1209_v16 = vrot.slane %v3279_v3, 1  ;;  %v3305_v46 = vld [vmem:[%s2655_s4 + $0xf8] sm:$0xff]  ;;  %v3308_v49 = vld [vmem:[%s2655_s4 + $0xe8] sm:$0xff] }
  0x78   : > { %2082 = vst [vmem:[%s2710_s29 + $0x428] sm:$0xff] %v1454_v11  ;;  %4954 = vst [vmem:[#allocation14_spill] sm:$0xff] %v3291_v37  ;;  %v1215_v32 = vrot.slane %v3282_v0, 1  ;;  %v1213_v11 = vrot.slane %v3291_v37, 1  ;;  %v1219_v48 = vrot.slane %v3294_v6, 1  ;;  %v1217_v52 = vrot.slane %v3297_v63, 1  ;;  %477 = vrot.lane.b32.xlu1 %v2875_v56, %s2525_s18  ;;  %475 = vrot.lane.b32.xlu0 %v2878_v57, %s2525_s18 }
  0x79   : > { %4955 = vst [vmem:[#allocation15_spill] sm:$0xff] %v3294_v6  ;;  %2086 = vst [vmem:[%s2710_s29 + $0x448] sm:$0xff] %v1458_v12  ;;  %v1430_v12 = vsel %vm1320_vm0, %v1209_v16, %v1211_v21  ;;  %v1432_v7 = vsel %vm1320_vm0, %v1207_v43, %v1209_v16  ;;  %v1223_v22 = vrot.slane %v3305_v46, 1  ;;  %v1221_v15 = vrot.slane %v3308_v49, 1 }
  0x7a   : > { %4957 = vst [vmem:[#allocation17_spill] sm:$0xff] %v3308_v49  ;;  %2084 = vst [vmem:[%s2710_s29 + $0x438] sm:$0xff] %v1456_v24  ;;  %v1464_v56 = vsub.f32 %v1432_v7, %v3236_v10  ;;  %v1466_v57 = vsub.f32 %v1430_v12, %v3279_v3  ;;  %v1426_v24 = vsel %vm1320_vm0, %v1213_v11, %v1215_v32  ;;  %v3336_v12 = vld [vmem:[%s2655_s4 + $0x118] sm:$0xff] }
  0x7b   : > { %2088 = vst [vmem:[%s2710_s29 + $0x458] sm:$0xff] %v1460_v13  ;;  %2090 = vst [vmem:[%s2710_s29 + $0x468] sm:$0xff] %v1462_v14  ;;  %v1428_v13 = vsel %vm1320_vm0, %v1211_v21, %v1213_v11  ;;  %v1470_v43 = vsub.f32 %v1426_v24, %v3291_v37  ;;  %v1422_v16 = vsel %vm1320_vm0, %v1217_v52, %v1219_v48 }
  0x7c   : > { %v1468_v14 = vsub.f32 %v1428_v13, %v3259_v61  ;;  %v1424_v7 = vsel %vm1320_vm0, %v1215_v32, %v1217_v52  ;;  %2092 = vst [vmem:[%s2710_s29 + $0x478] sm:$0xff] %v1464_v56  ;;  %2094 = vst [vmem:[%s2710_s29 + $0x488] sm:$0xff] %v1466_v57  ;;  %v1474_v21 = vsub.f32 %v1422_v16, %v3297_v63  ;;  %v3347_v13 = vld [vmem:[%s2655_s4 + $0x108] sm:$0xff]  ;;  %v3350_v32 = vld [vmem:[%s2655_s4 + $0x138] sm:$0xff]  ;;  %v1227_v56 = vrot.slane %v3336_v12, 1 }
  0x7d   : > { %v1472_v3 = vsub.f32 %v1424_v7, %v3282_v0  ;;  %v1418_v11 = vsel %vm1320_vm0, %v1221_v15, %v1223_v22  ;;  %v1420_v24 = vsel %vm1320_vm0, %v1219_v48, %v1221_v15  ;;  %v3353_v52 = vld [vmem:[%s2655_s4 + $0x128] sm:$0xff]  ;;  %481 = vrot.lane.b32.xlu1 %v2881_v58, %s2525_s18  ;;  %479 = vrot.lane.b32.xlu0 %v2895_v2, %s2525_s18  ;;  %v1225_v57 = vrot.slane %v3347_v13, 1  ;;  %v3366_v16 = vld [vmem:[%s2655_s4 + $0x158] sm:$0xff] }
  0x7e   : > { %4958 = vst [vmem:[#allocation18_spill] sm:$0xff] %v3353_v52  ;;  %2096 = vst [vmem:[%s2710_s29 + $0x498] sm:$0xff] %v1468_v14  ;;  %v1476_v15 = vsub.f32 %v1420_v24, %v3294_v6  ;;  %v1478_v48 = vsub.f32 %v1418_v11, %v3308_v49  ;;  %v3369_v58 = vld [vmem:[%s2655_s4 + $0x148] sm:$0xff]  ;;  %v1231_v2 = vrot.slane %v3350_v32, 1  ;;  %v1229_v14 = vrot.slane %v3353_v52, 1  ;;  %v3378_v11 = vld [vmem:[%s2655_s4 + $0x178] sm:$0xff] }
  0x7f   : > { %2098 = vst [vmem:[%s2710_s29 + $0x4a8] sm:$0xff] %v1470_v43  ;;  %4959 = vst [vmem:[#allocation19_spill] sm:$0xff] %v3366_v16  ;;  %v1235_v43 = vrot.slane %v3366_v16, 1  ;;  %v1233_v7 = vrot.slane %v3369_v58, 1  ;;  %v3381_v24 = vld [vmem:[%s2655_s4 + $0x168] sm:$0xff]  ;;  %v1239_v49 = vrot.slane %v3378_v11, 1 }
  0x80   : > { %4960 = vst [vmem:[#allocation20_spill] sm:$0xff] %v3369_v58  ;;  %2100 = vst [vmem:[%s2710_s29 + $0x4b8] sm:$0xff] %v1472_v3  ;;  %v1414_v3 = vsel %vm1320_vm0, %v1225_v57, %v1227_v56  ;;  %v1237_v63 = vrot.slane %v3381_v24, 1  ;;  %v3398_v0 = vld [vmem:[%s2655_s4 + $0x198] sm:$0xff] }
  0x81   : > { %2102 = vst [vmem:[%s2710_s29 + $0x4c8] sm:$0xff] %v1474_v21  ;;  %4961 = vst [vmem:[#allocation21_spill] sm:$0xff] %v3381_v24  ;;  %v1416_v21 = vsel %vm1320_vm0, %v1223_v22, %v1225_v57  ;;  %v1482_v37 = vsub.f32 %v1414_v3, %v3347_v13  ;;  %485 = vrot.lane.b32.xlu1 %v2898_v4, %s2525_s18  ;;  %483 = vrot.lane.b32.xlu0 %v2915_v18, %s2525_s18 }
  0x82   : > { %2104 = vst [vmem:[%s2710_s29 + $0x4d8] sm:$0xff] %v1476_v15  ;;  %2106 = vst [vmem:[%s2710_s29 + $0x4e8] sm:$0xff] %v1478_v48  ;;  %v1480_v6 = vsub.f32 %v1416_v21, %v3305_v46  ;;  %v1410_v15 = vsel %vm1320_vm0, %v1229_v14, %v1231_v2  ;;  %v1412_v48 = vsel %vm1320_vm0, %v1227_v56, %v1229_v14  ;;  %v1243_v56 = vrot.slane %v3398_v0, 1 }
  0x83   : > { %v1484_v22 = vsub.f32 %v1412_v48, %v3336_v12  ;;  %v1486_v57 = vsub.f32 %v1410_v15, %v3353_v52  ;;  %v1406_v3 = vsel %vm1320_vm0, %v1233_v7, %v1235_v43  ;;  %2110 = vst [vmem:[%s2710_s29 + $0x508] sm:$0xff] %v1482_v37  ;;  %v1408_v4 = vsel %vm1320_vm0, %v1231_v2, %v1233_v7  ;;  %v3419_v15 = vld [vmem:[%s2655_s4 + $0x188] sm:$0xff]  ;;  %v3422_v48 = vld [vmem:[%s2655_s4 + $0x1b8] sm:$0xff] }
  0x84   : > { %2108 = vst [vmem:[%s2710_s29 + $0x4f8] sm:$0xff] %v1480_v6  ;;  %v1490_v18 = vsub.f32 %v1406_v3, %v3369_v58  ;;  %v1402_v14 = vsel %vm1320_vm0, %v1237_v63, %v1239_v49  ;;  %v1404_v21 = vsel %vm1320_vm0, %v1235_v43, %v1237_v63  ;;  %4962 = vst [vmem:[#allocation22_spill] sm:$0xff] %v3419_v15  ;;  %v1241_v7 = vrot.slane %v3419_v15, 1  ;;  %v3431_v63 = vld [vmem:[%s2655_s4 + $0x1a8] sm:$0xff]  ;;  %v3434_v43 = vld [vmem:[%s2655_s4 + $0x1d8] sm:$0xff] }
  0x85   : > { %2112 = vst [vmem:[%s2710_s29 + $0x518] sm:$0xff] %v1484_v22  ;;  %2114 = vst [vmem:[%s2710_s29 + $0x528] sm:$0xff] %v1486_v57  ;;  %v1488_v37 = vsub.f32 %v1408_v4, %v3350_v32  ;;  %v1492_v6 = vsub.f32 %v1404_v21, %v3366_v16  ;;  %v1494_v2 = vsub.f32 %v1402_v14, %v3381_v24  ;;  %v3437_v3 = vld [vmem:[%s2655_s4 + $0x1c8] sm:$0xff]  ;;  %v1247_v22 = vrot.slane %v3422_v48, 1  ;;  %v3445_v58 = vld [vmem:[%s2655_s4 + $0x1f8] sm:$0xff] }
  0x86   : > { %2118 = vst [vmem:[%s2710_s29 + $0x548] sm:$0xff] %v1490_v18  ;;  %v1245_v57 = vrot.slane %v3431_v63, 1  ;;  %v1251_v4 = vrot.slane %v3434_v43, 1  ;;  %v1249_v21 = vrot.slane %v3437_v3, 1  ;;  %v3448_v14 = vld [vmem:[%s2655_s4 + $0x1e8] sm:$0xff]  ;;  %489 = vrot.lane.b32.xlu1 %v2924_v27, %s2525_s18  ;;  %487 = vrot.lane.b32.xlu0 %v2927_v28, %s2525_s18  ;;  %v1398_v18 = vsel %vm1320_vm0, %v1241_v7, %v1243_v56 }
  0x87   : > { %4963 = vst [vmem:[#allocation23_spill] sm:$0xff] %v3448_v14  ;;  %2116 = vst [vmem:[%s2710_s29 + $0x538] sm:$0xff] %v1488_v37  ;;  %v1400_v24 = vsel %vm1320_vm0, %v1239_v49, %v1241_v7  ;;  %v1255_v16 = vrot.slane %v3445_v58, 1  ;;  %v1253_v52 = vrot.slane %v3448_v14, 1  ;;  %v1498_v28 = vsub.f32 %v1398_v18, %v3419_v15  ;;  %v3476_v18 = vld [vmem:[%s2655_s4 + $0x218] sm:$0xff] }
  0x88   : > { %2120 = vst [vmem:[%s2710_s29 + $0x558] sm:$0xff] %v1492_v6  ;;  %2122 = vst [vmem:[%s2710_s29 + $0x568] sm:$0xff] %v1494_v2  ;;  %v1496_v27 = vsub.f32 %v1400_v24, %v3378_v11  ;;  %v1394_v37 = vsel %vm1320_vm0, %v1245_v57, %v1247_v22  ;;  %v1396_v6 = vsel %vm1320_vm0, %v1243_v56, %v1245_v57 }
  0x89   : > { %v1500_v2 = vsub.f32 %v1396_v6, %v3398_v0  ;;  %v1502_v49 = vsub.f32 %v1394_v37, %v3431_v63  ;;  %v1390_v7 = vsel %vm1320_vm0, %v1249_v21, %v1251_v4  ;;  %v1392_v24 = vsel %vm1320_vm0, %v1247_v22, %v1249_v21  ;;  %2126 = vst [vmem:[%s2710_s29 + $0x588] sm:$0xff] %v1498_v28  ;;  %v3487_v6 = vld [vmem:[%s2655_s4 + $0x208] sm:$0xff]  ;;  %v3490_v22 = vld [vmem:[%s2655_s4 + $0x238] sm:$0xff] }
  0x8a   : > { %2124 = vst [vmem:[%s2710_s29 + $0x578] sm:$0xff] %v1496_v27  ;;  %v1504_v15 = vsub.f32 %v1392_v24, %v3422_v48  ;;  %v1506_v56 = vsub.f32 %v1390_v7, %v3437_v3  ;;  %v1386_v57 = vsel %vm1320_vm0, %v1253_v52, %v1255_v16  ;;  %v1388_v37 = vsel %vm1320_vm0, %v1251_v4, %v1253_v52  ;;  %v3493_v21 = vld [vmem:[%s2655_s4 + $0x228] sm:$0xff]  ;;  %v3506_v7 = vld [vmem:[%s2655_s4 + $0x258] sm:$0xff] }
  0x8b   : > { %493 = vrot.lane.b32.xlu1 %v2930_v29, %s2525_s18  ;;  %491 = vrot.lane.b32.xlu0 %v2943_v35, %s2525_s18  ;;  %2128 = vst [vmem:[%s2710_s29 + $0x598] sm:$0xff] %v1500_v2  ;;  %2130 = vst [vmem:[%s2710_s29 + $0x5a8] sm:$0xff] %v1502_v49  ;;  %v1508_v27 = vsub.f32 %v1388_v37, %v3434_v43  ;;  %v1510_v52 = vsub.f32 %v1386_v57, %v3448_v14  ;;  %v1259_v4 = vrot.slane %v3476_v18, 1 }
  0x8c   : > { %v1257_v28 = vrot.slane %v3487_v6, 1  ;;  %v3509_v24 = vld [vmem:[%s2655_s4 + $0x248] sm:$0xff]  ;;  %2132 = vst [vmem:[%s2710_s29 + $0x5b8] sm:$0xff] %v1504_v15  ;;  %2134 = vst [vmem:[%s2710_s29 + $0x5c8] sm:$0xff] %v1506_v56  ;;  %v1263_v29 = vrot.slane %v3490_v22, 1  ;;  %v1261_v35 = vrot.slane %v3493_v21, 1 }
  0x8d   : > { %v1267_v2 = vrot.slane %v3506_v7, 1  ;;  %v1265_v49 = vrot.slane %v3509_v24, 1  ;;  %2136 = vst [vmem:[%s2710_s29 + $0x5d8] sm:$0xff] %v1508_v27  ;;  %2138 = vst [vmem:[%s2710_s29 + $0x5e8] sm:$0xff] %v1510_v52  ;;  %v3530_v52 = vld [vmem:[%s2655_s4 + $0x278] sm:$0xff] }
  0x8e   : > { %v1382_v57 = vsel %vm1320_vm0, %v1257_v28, %v1259_v4  ;;  %v1384_v15 = vsel %vm1320_vm0, %v1255_v16, %v1257_v28  ;;  %v1378_v14 = vsel %vm1320_vm0, %v1261_v35, %v1263_v29  ;;  %v1380_v27 = vsel %vm1320_vm0, %v1259_v4, %v1261_v35  ;;  %v3542_v35 = vld [vmem:[%s2655_s4 + $0x268] sm:$0xff] }
  0x8f   : > { %v1512_v56 = vsub.f32 %v1384_v15, %v3445_v58  ;;  %v1514_v37 = vsub.f32 %v1382_v57, %v3487_v6  ;;  %497 = vrot.lane.b32.xlu1 %v2946_v44, %s2525_s18  ;;  %495 = vrot.lane.b32.xlu0 %v2955_v25, %s2525_s18  ;;  %v1516_v16 = vsub.f32 %v1380_v27, %v3476_v18  ;;  %v1271_v4 = vrot.slane %v3530_v52, 1  ;;  %v3554_v27 = vld [vmem:[%s2655_s4 + $0x298] sm:$0xff] }
  0x90   : > { %v1518_v28 = vsub.f32 %v1378_v14, %v3493_v21  ;;  %v1374_v57 = vsel %vm1320_vm0, %v1265_v49, %v1267_v2  ;;  %v1376_v44 = vsel %vm1320_vm0, %v1263_v29, %v1265_v49  ;;  %v1269_v15 = vrot.slane %v3542_v35, 1 }
  0x91   : > { %2140 = vst [vmem:[%s2710_s29 + $0x5f8] sm:$0xff] %v1512_v56  ;;  %2142 = vst [vmem:[%s2710_s29 + $0x608] sm:$0xff] %v1514_v37  ;;  %v1522_v25 = vsub.f32 %v1374_v57, %v3509_v24  ;;  %v1520_v14 = vsub.f32 %v1376_v44, %v3490_v22  ;;  %v1275_v49 = vrot.slane %v3554_v27, 1  ;;  %v3563_v37 = vld [vmem:[%s2655_s4 + $0x288] sm:$0xff]  ;;  %v3580_v44 = vld [vmem:[%s2655_s4 + $0x2b8] sm:$0xff] }
  0x92   : > { %2144 = vst [vmem:[%s2710_s29 + $0x618] sm:$0xff] %v1516_v16  ;;  %2146 = vst [vmem:[%s2710_s29 + $0x628] sm:$0xff] %v1518_v28  ;;  %v1370_v56 = vsel %vm1320_vm0, %v1269_v15, %v1271_v4  ;;  %v1372_v29 = vsel %vm1320_vm0, %v1267_v2, %v1269_v15  ;;  %v1273_v2 = vrot.slane %v3563_v37, 1  ;;  %v1279_v15 = vrot.slane %v3580_v44, 1 }
  0x93   : > { %2150 = vst [vmem:[%s2710_s29 + $0x648] sm:$0xff] %v1522_v25  ;;  %501 = vrot.lane.b32.xlu1 %v2958_v40, %s2525_s18  ;;  %499 = vrot.lane.b32.xlu0 %v2975_v59, %s2525_s18  ;;  %2148 = vst [vmem:[%s2710_s29 + $0x638] sm:$0xff] %v1520_v14  ;;  %v1524_v16 = vsub.f32 %v1372_v29, %v3506_v7  ;;  %v1526_v28 = vsub.f32 %v1370_v56, %v3542_v35 }
  0x94   : > { %v1366_v57 = vsel %vm1320_vm0, %v1273_v2, %v1275_v49  ;;  %v1368_v40 = vsel %vm1320_vm0, %v1271_v4, %v1273_v2  ;;  %v3586_v14 = vld [vmem:[%s2655_s4 + $0x2a8] sm:$0xff] }
  0x95   : > { %2152 = vst [vmem:[%s2710_s29 + $0x658] sm:$0xff] %v1524_v16  ;;  %2154 = vst [vmem:[%s2710_s29 + $0x668] sm:$0xff] %v1526_v28  ;;  %v1528_v59 = vsub.f32 %v1368_v40, %v3530_v52  ;;  %v1530_v25 = vsub.f32 %v1366_v57, %v3563_v37  ;;  %v1277_v4 = vrot.slane %v3586_v14, 1  ;;  %v3600_v16 = vld [vmem:[%s2655_s4 + $0x2d8] sm:$0xff]  ;;  %v3606_v2 = vld [vmem:[%s2655_s4 + $0x2c8] sm:$0xff] }
  0x97   : > { %505 = vrot.lane.b32.xlu1 %v3003_v17, %s2525_s18  ;;  %503 = vrot.lane.b32.xlu0 %v3006_v19, %s2525_s18  ;;  %2156 = vst [vmem:[%s2710_s29 + $0x678] sm:$0xff] %v1528_v59  ;;  %2158 = vst [vmem:[%s2710_s29 + $0x688] sm:$0xff] %v1530_v25  ;;  %v1362_v56 = vsel %vm1320_vm0, %v1277_v4, %v1279_v15  ;;  %v1364_v29 = vsel %vm1320_vm0, %v1275_v49, %v1277_v4  ;;  %v1283_v19 = vrot.slane %v3600_v16, 1 }
  0x98   : > { %v1532_v17 = vsub.f32 %v1364_v29, %v3554_v27  ;;  %v1534_v28 = vsub.f32 %v1362_v56, %v3586_v14  ;;  %v1281_v49 = vrot.slane %v3606_v2, 1  ;;  %v3620_v59 = vld [vmem:[%s2655_s4 + $0x2f8] sm:$0xff]  ;;  %v3626_v4 = vld [vmem:[%s2655_s4 + $0x2e8] sm:$0xff] }
  0x9a   : > { %2160 = vst [vmem:[%s2710_s29 + $0x698] sm:$0xff] %v1532_v17  ;;  %2162 = vst [vmem:[%s2710_s29 + $0x6a8] sm:$0xff] %v1534_v28  ;;  %v1358_v57 = vsel %vm1320_vm0, %v1281_v49, %v1283_v19  ;;  %v1360_v40 = vsel %vm1320_vm0, %v1279_v15, %v1281_v49  ;;  %v1285_v15 = vrot.slane %v3626_v4, 1  ;;  %v3640_v17 = vld [vmem:[%s2655_s4 + $0x318] sm:$0xff]  ;;  %v3646_v49 = vld [vmem:[%s2655_s4 + $0x308] sm:$0xff] }
  0x9b   : > { %509 = vrot.lane.b32.xlu1 %v3015_v31, %s2525_s18  ;;  %507 = vrot.lane.b32.xlu0 %v3018_v33, %s2525_s18  ;;  %v1536_v31 = vsub.f32 %v1360_v40, %v3580_v44  ;;  %v1538_v25 = vsub.f32 %v1358_v57, %v3606_v2  ;;  %v1287_v33 = vrot.slane %v3620_v59, 1 }
  0x9c   : > { %v1356_v29 = vsel %vm1320_vm0, %v1283_v19, %v1285_v15  ;;  %v1289_v19 = vrot.slane %v3646_v49, 1 }
  0x9d   : > { %2164 = vst [vmem:[%s2710_s29 + $0x6b8] sm:$0xff] %v1536_v31  ;;  %2166 = vst [vmem:[%s2710_s29 + $0x6c8] sm:$0xff] %v1538_v25  ;;  %v1354_v56 = vsel %vm1320_vm0, %v1285_v15, %v1287_v33  ;;  %v3660_v31 = vld [vmem:[%s2655_s4 + $0x338] sm:$0xff]  ;;  %v3666_v15 = vld [vmem:[%s2655_s4 + $0x328] sm:$0xff] }
  0x9e   : > { %v1542_v28 = vsub.f32 %v1354_v56, %v3626_v4  ;;  %v1352_v40 = vsel %vm1320_vm0, %v1287_v33, %v1289_v19  ;;  %v1293_v33 = vrot.slane %v3666_v15, 1 }
  0x9f   : > { %513 = vrot.lane.b32.xlu1 %v3021_v34, %s2525_s18  ;;  %511 = vrot.lane.b32.xlu0 %v3035_v41, %s2525_s18  ;;  %v1540_v34 = vsub.f32 %v1356_v29, %v3600_v16  ;;  %v1291_v41 = vrot.slane %v3640_v17, 1 }
  0xa0   : > { %2170 = vst [vmem:[%s2710_s29 + $0x6e8] sm:$0xff] %v1542_v28 }
  0xa1   : > { %2168 = vst [vmem:[%s2710_s29 + $0x6d8] sm:$0xff] %v1540_v34  ;;  %v1350_v57 = vsel %vm1320_vm0, %v1289_v19, %v1291_v41  ;;  %v1348_v29 = vsel %vm1320_vm0, %v1291_v41, %v1293_v33  ;;  %v3680_v34 = vld [vmem:[%s2655_s4 + $0x358] sm:$0xff]  ;;  %v3686_v19 = vld [vmem:[%s2655_s4 + $0x348] sm:$0xff] }
  0xa2   : > { %v1546_v25 = vsub.f32 %v1350_v57, %v3646_v49  ;;  %v1297_v41 = vrot.slane %v3686_v19, 1 }
  0xa3   : > { %517 = vrot.lane.b32.xlu1 %v3038_v42, %s2525_s18  ;;  %515 = vrot.lane.b32.xlu0 %v3055_v62, %s2525_s18  ;;  %v1544_v42 = vsub.f32 %v1352_v40, %v3620_v59  ;;  %v1295_v62 = vrot.slane %v3660_v31, 1 }
  0xa4   : > { %2174 = vst [vmem:[%s2710_s29 + $0x708] sm:$0xff] %v1546_v25 }
  0xa5   : > { %2172 = vst [vmem:[%s2710_s29 + $0x6f8] sm:$0xff] %v1544_v42  ;;  %v1346_v56 = vsel %vm1320_vm0, %v1293_v33, %v1295_v62  ;;  %v1344_v40 = vsel %vm1320_vm0, %v1295_v62, %v1297_v41  ;;  %v3700_v42 = vld [vmem:[%s2655_s4 + $0x378] sm:$0xff]  ;;  %v3706_v33 = vld [vmem:[%s2655_s4 + $0x368] sm:$0xff] }
  0xa6   : > { %v1550_v28 = vsub.f32 %v1346_v56, %v3666_v15  ;;  %v1301_v62 = vrot.slane %v3706_v33, 1 }
  0xa7   : > { %521 = vrot.lane.b32.xlu1 %v3064_v39, %s2525_s18  ;;  %519 = vrot.lane.b32.xlu0 %v3067_v51, %s2525_s18  ;;  %v1548_v39 = vsub.f32 %v1348_v29, %v3640_v17  ;;  %v1299_v51 = vrot.slane %v3680_v34, 1 }
  0xa8   : > { %2178 = vst [vmem:[%s2710_s29 + $0x728] sm:$0xff] %v1550_v28 }
  0xa9   : > { %2176 = vst [vmem:[%s2710_s29 + $0x718] sm:$0xff] %v1548_v39  ;;  %v1342_v57 = vsel %vm1320_vm0, %v1297_v41, %v1299_v51  ;;  %v1340_v29 = vsel %vm1320_vm0, %v1299_v51, %v1301_v62  ;;  %v3720_v39 = vld [vmem:[%s2655_s4 + $0x398] sm:$0xff] }
  0xaa   : > { %v1554_v25 = vsub.f32 %v1342_v57, %v3686_v19  ;;  %v1556_v28 = vsub.f32 %v1340_v29, %v3680_v34  ;;  %v1307_v41 = vrot.slane %v3720_v39, 1  ;;  %v3756_v29 = vld [vmem:[%s2655_s4 + $0x3b8] sm:$0xff] }
  0xab   : > { %525 = vrot.lane.b32.xlu1 %v3070_v9, %s2525_s18  ;;  %523 = vrot.lane.b32.xlu0 %v3083_v23, %s2525_s18  ;;  %v1552_v9 = vsub.f32 %v1344_v40, %v3660_v31  ;;  %v1303_v23 = vrot.slane %v3700_v42, 1 }
  0xac   : > { %2182 = vst [vmem:[%s2710_s29 + $0x748] sm:$0xff] %v1554_v25  ;;  %2184 = vst [vmem:[%s2710_s29 + $0x758] sm:$0xff] %v1556_v28  ;;  %v1311_v28 = vrot.slane %v3756_v29, 1 }
  0xad   : > { %2180 = vst [vmem:[%s2710_s29 + $0x738] sm:$0xff] %v1552_v9  ;;  %v1338_v56 = vsel %vm1320_vm0, %v1301_v62, %v1303_v23 }
  0xaf   : > { %529 = vrot.lane.b32.xlu1 %v3086_v5, %s2525_s18  ;;  %527 = vrot.lane.b32.xlu0 %v3095_v45, %s2525_s18  ;;  %v1558_v5 = vsub.f32 %v1338_v56, %v3706_v33  ;;  %v3726_v45 = vld [vmem:[%s2655_s4 + $0x388] sm:$0xff] }
  0xb0   : > { %v1305_v51 = vrot.slane %v3726_v45, 1  ;;  %v3735_v57 = vpop.permute.xlu1 %423 }
  0xb1   : > { %2186 = vst [vmem:[%s2710_s29 + $0x768] sm:$0xff] %v1558_v5  ;;  %4964 = vst [vmem:[#allocation24_spill] sm:$0xff] %v3735_v57  ;;  %v3737_v40 = vpop.permute.xlu0 %419 }
  0xb2   : > { %v1334_v9 = vsel %vm1320_vm0, %v1305_v51, %v1307_v41  ;;  %v1336_v25 = vsel %vm1320_vm0, %v1303_v23, %v1305_v51  ;;  %v3759_v23 = vld [vmem:[%s2655_s4 + $0x3a8] sm:$0xff] }
  0xb3   : > { %533 = vrot.lane.b32.xlu1 %v3098_v36, %s2525_s18  ;;  %531 = vrot.lane.b32.xlu0 %v3115_v47, %s2525_s18  ;;  %v1560_v36 = vsub.f32 %v1336_v25, %v3700_v42  ;;  %v1562_v47 = vsub.f32 %v1334_v9, %v3726_v45 }
  0xb4   : > { %v3751_v62 = vpop.permute.xlu1 %425 }
  0xb5   : > { %2188 = vst [vmem:[%s2710_s29 + $0x778] sm:$0xff] %v1560_v36  ;;  %2190 = vst [vmem:[%s2710_s29 + $0x788] sm:$0xff] %v1562_v47  ;;  %v3753_v56 = vpop.permute.xlu0 %421  ;;  %v3781_v47 = vld [vmem:[%s2655_s4 + $0x3c8] sm:$0xff] }
  0xb6   : > { %v1313_v57 = vrot.slane %v3781_v47, 1 }
  0xb7   : > { %537 = vrot.lane.b32.xlu1 %v3144_v26, %s2525_s18  ;;  %535 = vrot.lane.b32.xlu0 %v3147_v20, %s2525_s18  ;;  %v1309_v26 = vrot.slane %v3759_v23, 1 }
  0xb8   : > { %v3771_v51 = vpop.permute.xlu1 %429 }
  0xb9   : > { %v1330_v20 = vsel %vm1320_vm0, %v1309_v26, %v1311_v28  ;;  %v1332_v5 = vsel %vm1320_vm0, %v1307_v41, %v1309_v26  ;;  %4965 = vst [vmem:[#allocation25_spill] sm:$0xff] %v3771_v51  ;;  %v3773_v9 = vpop.permute.xlu0 %427  ;;  %v1328_v26 = vsel %vm1320_vm0, %v1311_v28, %v1313_v57  ;;  %v3802_v51 = vld [vmem:[%s2655_s4 + $0x3f8] sm:$0xff] }
  0xba   : > { %4966 = vst [vmem:[#allocation26_spill] sm:$0xff] %v3773_v9  ;;  %v1564_v25 = vsub.f32 %v1332_v5, %v3720_v39  ;;  %v1566_v36 = vsub.f32 %v1330_v20, %v3759_v23  ;;  %v1568_v9 = vsub.f32 %v1328_v26, %v3756_v29 }
  0xbb   : > { %541 = vrot.lane.b32.xlu1 %v3156_v54, %s2525_s18  ;;  %539 = vrot.lane.b32.xlu0 %v3159_v55, %s2525_s18  ;;  %v3778_v54 = vld [vmem:[%s2655_s4 + $0x3d8] sm:$0xff] }
  0xbc   : > { %v1315_v55 = vrot.slane %v3778_v54, 1  ;;  %2192 = vst [vmem:[%s2710_s29 + $0x798] sm:$0xff] %v1564_v25  ;;  %2194 = vst [vmem:[%s2710_s29 + $0x7a8] sm:$0xff] %v1566_v36  ;;  %v3795_v20 = vpop.permute.xlu1 %433  ;;  %v1319_v25 = vrot.slane %v3802_v51, 1 }
  0xbd   : > { %4967 = vst [vmem:[#allocation27_spill] sm:$0xff] %v3795_v20  ;;  %v3797_v5 = vpop.permute.xlu0 %431  ;;  %2196 = vst [vmem:[%s2710_s29 + $0x7b8] sm:$0xff] %v1568_v9 }
  0xbe   : > { %v1326_v41 = vsel %vm1320_vm0, %v1313_v57, %v1315_v55  ;;  %4968 = vst [vmem:[#allocation28_spill] sm:$0xff] %v3797_v5  ;;  %v4969_v57 = vrot.slane %v3204_v53, 1 }
  0xbf   : > { %545 = vrot.lane.b32.xlu1 %v3162_v60, %s2525_s18  ;;  %543 = vrot.lane.b32.xlu0 %v3176_v38, %s2525_s18  ;;  %v1570_v60 = vsub.f32 %v1326_v41, %v3781_v47  ;;  %v3805_v38 = vld [vmem:[%s2655_s4 + $0x3e8] sm:$0xff] }
  0xc0   : > { %v1317_v36 = vrot.slane %v3805_v38, 1  ;;  %v1448_v28 = vsel %vm1320_vm0, %v1319_v25, %v4969_v57  ;;  %v4971_v57 = vld [vmem:[#allocation9_spill] sm:$0xff] }
  0xc1   : > { %2198 = vst [vmem:[%s2710_s29 + $0x7c8] sm:$0xff] %v1570_v60  ;;  %v3823_v5 = vpop.permute.xlu1 %437  ;;  %v1576_v20 = vsub.f32 %v1448_v28, %v3802_v51  ;;  %v4972_v28 = vld [vmem:[#allocation10_spill] sm:$0xff] }
  0xc2   : > { %v1322_v41 = vsel %vm1320_vm0, %v1317_v36, %v1319_v25  ;;  %v1324_v26 = vsel %vm1320_vm0, %v1315_v55, %v1317_v36 }
  0xc3   : > { %549 = vrot.lane.b32.xlu1 %v3179_v8, %s2525_s18  ;;  %547 = vrot.lane.b32.xlu0 %v3204_v53, %s2525_s18  ;;  %v3825_v8 = vpop.permute.xlu0 %435  ;;  %v1572_v9 = vsub.f32 %v1324_v26, %v3778_v54  ;;  %v1574_v60 = vsub.f32 %v1322_v41, %v3805_v38  ;;  %v1832_v1 = vsel %vm285_vm1, 0.0, %v1576_v20 }
  0xc4   : > { %2204 = vst [vmem:[%s2710_s29 + $0x7f8] sm:$0xff] %v1832_v1  ;;  %v4976_v1 = vld [vmem:[#allocation13_spill] sm:$0xff] }
  0xc5   : > { %2200 = vst [vmem:[%s2710_s29 + $0x7d8] sm:$0xff] %v1572_v9  ;;  %2202 = vst [vmem:[%s2710_s29 + $0x7e8] sm:$0xff] %v1574_v60  ;;  %v3839_v55 = vpop.permute.xlu1 %441  ;;  %v4974_v9 = vld [vmem:[#allocation12_spill] sm:$0xff] }
  0xc7   : > { %553 = vrot.lane.b32.xlu1 %v3207_v30, %s2525_s18  ;;  %551 = vrot.lane.b32.xlu0 %v3221_v50, %s2525_s18  ;;  %v3841_v36 = vpop.permute.xlu0 %439  ;;  %v4973_v50 = vld [vmem:[#allocation11_spill] sm:$0xff] }
  0xc9   : > { %v3847_v30 = vpop.permute.xlu1 %445 }
  0xcb   : > { %557 = vrot.lane.b32.xlu1 %v4971_v57, %s2525_s18  ;;  %555 = vrot.lane.b32.xlu0 %v4972_v28, %s2525_s18  ;;  %v3849_v41 = vpop.permute.xlu0 %443 }
  0xcd   : > { %v3855_v20 = vpop.permute.xlu1 %449 }
  0xcf   : > { %561 = vrot.lane.b32.xlu1 %v3236_v10, %s2525_s18  ;;  %559 = vrot.lane.b32.xlu0 %v4973_v50, %s2525_s18  ;;  %v3857_v26 = vpop.permute.xlu0 %447  ;;  %v4977_v10 = vld [vmem:[#allocation14_spill] sm:$0xff]  ;;  %v4979_v50 = vld [vmem:[#allocation15_spill] sm:$0xff] }
  0xd1   : > { %v3863_v60 = vpop.permute.xlu1 %453 }
  0xd2   : > { %4975 = vst [vmem:[#allocation8_spill] sm:$0xff] %v3863_v60 }
  0xd3   : > { %565 = vrot.lane.b32.xlu1 %v3259_v61, %s2525_s18  ;;  %563 = vrot.lane.b32.xlu0 %v4974_v9, %s2525_s18  ;;  %v3865_v25 = vpop.permute.xlu0 %451  ;;  %v4980_v61 = vld [vmem:[#allocation16_spill] sm:$0xff] }
  0xd5   : > { %v3871_v57 = vpop.permute.xlu1 %457 }
  0xd6   : > { %4978 = vst [vmem:[#allocation9_spill] sm:$0xff] %v3871_v57 }
  0xd7   : > { %569 = vrot.lane.b32.xlu1 %v4976_v1, %s2525_s18  ;;  %567 = vrot.lane.b32.xlu0 %v4977_v10, %s2525_s18  ;;  %v3873_v28 = vpop.permute.xlu0 %455  ;;  %v4981_v1 = vld [vmem:[#allocation17_spill] sm:$0xff] }
  0xd9   : > { %v3879_v9 = vpop.permute.xlu1 %461 }
  0xdb   : > { %573 = vrot.lane.b32.xlu1 %v4979_v50, %s2525_s18  ;;  %571 = vrot.lane.b32.xlu0 %v4980_v61, %s2525_s18  ;;  %v3881_v60 = vpop.permute.xlu0 %459 }
  0xdd   : > { %v3887_v10 = vpop.permute.xlu1 %465 }
  0xde   : > { %4982 = vst [vmem:[#allocation10_spill] sm:$0xff] %v3887_v10 }
  0xdf   : > { %577 = vrot.lane.b32.xlu1 %v3305_v46, %s2525_s18  ;;  %575 = vrot.lane.b32.xlu0 %v4981_v1, %s2525_s18  ;;  %v3889_v57 = vpop.permute.xlu0 %463  ;;  %v4985_v46 = vld [vmem:[#allocation18_spill] sm:$0xff] }
  0xe0   : > { %4983 = vst [vmem:[#allocation11_spill] sm:$0xff] %v3889_v57  ;;  %v4987_v57 = vld [vmem:[#allocation19_spill] sm:$0xff] }
  0xe1   : > { %v3895_v50 = vpop.permute.xlu1 %469 }
  0xe2   : > { %4984 = vst [vmem:[#allocation12_spill] sm:$0xff] %v3895_v50 }
  0xe3   : > { %581 = vrot.lane.b32.xlu1 %v3336_v12, %s2525_s18  ;;  %579 = vrot.lane.b32.xlu0 %v3347_v13, %s2525_s18  ;;  %v3897_v61 = vpop.permute.xlu0 %467  ;;  %v4988_v12 = vld [vmem:[#allocation20_spill] sm:$0xff] }
  0xe5   : > { %v3903_v1 = vpop.permute.xlu1 %473 }
  0xe6   : > { %4986 = vst [vmem:[#allocation13_spill] sm:$0xff] %v3903_v1 }
  0xe7   : > { %585 = vrot.lane.b32.xlu1 %v3350_v32, %s2525_s18  ;;  %583 = vrot.lane.b32.xlu0 %v4985_v46, %s2525_s18  ;;  %v3905_v10 = vpop.permute.xlu0 %471  ;;  %v4990_v32 = vld [vmem:[#allocation21_spill] sm:$0xff] }
  0xea   : > { %v3911_v13 = vpop.permute.xlu1 %477 }
  0xeb   : > { %589 = vrot.lane.b32.xlu1 %v4987_v57, %s2525_s18  ;;  %587 = vrot.lane.b32.xlu0 %v4988_v12, %s2525_s18  ;;  %4989 = vst [vmem:[#allocation14_spill] sm:$0xff] %v3911_v13  ;;  %v3913_v50 = vpop.permute.xlu0 %475  ;;  %v4991_v57 = vld [vmem:[#allocation22_spill] sm:$0xff] }
  0xef   : > { %593 = vrot.lane.b32.xlu1 %v3378_v11, %s2525_s18  ;;  %591 = vrot.lane.b32.xlu0 %v4990_v32, %s2525_s18  ;;  %v3919_v46 = vpop.permute.xlu1 %481  ;;  %v3921_v1 = vpop.permute.xlu0 %479 }
  0xf3   : > { %597 = vrot.lane.b32.xlu1 %v3398_v0, %s2525_s18  ;;  %595 = vrot.lane.b32.xlu0 %v4991_v57, %s2525_s18  ;;  %v3927_v12 = vpop.permute.xlu1 %485  ;;  %v3929_v13 = vpop.permute.xlu0 %483 }
  0xf7   : > { %601 = vrot.lane.b32.xlu1 %v3422_v48, %s2525_s18  ;;  %599 = vrot.lane.b32.xlu0 %v3431_v63, %s2525_s18  ;;  %v4993_v48 = vld [vmem:[#allocation23_spill] sm:$0xff] }
  0xf8   : > { %v3935_v11 = vpop.permute.xlu1 %489  ;;  %v3937_v32 = vpop.permute.xlu0 %487 }
  0xf9   : > { %4992 = vst [vmem:[#allocation15_spill] sm:$0xff] %v3935_v11 }
  0xfb   : > { %605 = vrot.lane.b32.xlu1 %v3434_v43, %s2525_s18  ;;  %603 = vrot.lane.b32.xlu0 %v3437_v3, %s2525_s18 }
  0xfd   : > { %v3943_v0 = vpop.permute.xlu1 %493  ;;  %v3945_v57 = vpop.permute.xlu0 %491 }
  0xff   : > { %609 = vrot.lane.b32.xlu1 %v3445_v58, %s2525_s18  ;;  %607 = vrot.lane.b32.xlu0 %v4993_v48, %s2525_s18 }
 0x101   : > { %v3951_v63 = vpop.permute.xlu1 %497  ;;  %v3953_v11 = vpop.permute.xlu0 %495 }
 0x103   : > { %613 = vrot.lane.b32.xlu1 %v3476_v18, %s2525_s18  ;;  %611 = vrot.lane.b32.xlu0 %v3487_v6, %s2525_s18 }
 0x105   : > { %v3959_v43 = vpop.permute.xlu1 %501  ;;  %v3961_v3 = vpop.permute.xlu0 %499 }
 0x107   : > { %617 = vrot.lane.b32.xlu1 %v3490_v22, %s2525_s18  ;;  %615 = vrot.lane.b32.xlu0 %v3493_v21, %s2525_s18 }
 0x109   : > { %v3967_v58 = vpop.permute.xlu1 %505  ;;  %v3969_v48 = vpop.permute.xlu0 %503 }
 0x10b   : > { %621 = vrot.lane.b32.xlu1 %v3506_v7, %s2525_s18  ;;  %619 = vrot.lane.b32.xlu0 %v3509_v24, %s2525_s18 }
 0x10d   : > { %v3975_v18 = vpop.permute.xlu1 %509  ;;  %v3977_v6 = vpop.permute.xlu0 %507 }
 0x10f   : > { %625 = vrot.lane.b32.xlu1 %v3530_v52, %s2525_s18  ;;  %623 = vrot.lane.b32.xlu0 %v3542_v35, %s2525_s18 }
 0x111   : > { %v3983_v22 = vpop.permute.xlu1 %513  ;;  %v3985_v21 = vpop.permute.xlu0 %511 }
 0x113   : > { %629 = vrot.lane.b32.xlu1 %v3554_v27, %s2525_s18  ;;  %627 = vrot.lane.b32.xlu0 %v3563_v37, %s2525_s18 }
 0x115   : > { %v3991_v7 = vpop.permute.xlu1 %517  ;;  %v3993_v24 = vpop.permute.xlu0 %515 }
 0x117   : > { %633 = vrot.lane.b32.xlu1 %v3580_v44, %s2525_s18  ;;  %631 = vrot.lane.b32.xlu0 %v3586_v14, %s2525_s18 }
 0x119   : > { %v3999_v52 = vpop.permute.xlu1 %521  ;;  %v4001_v35 = vpop.permute.xlu0 %519 }
 0x11b   : > { %637 = vrot.lane.b32.xlu1 %v3600_v16, %s2525_s18  ;;  %635 = vrot.lane.b32.xlu0 %v3606_v2, %s2525_s18 }
 0x11d   : > { %v4007_v27 = vpop.permute.xlu1 %525  ;;  %v4009_v37 = vpop.permute.xlu0 %523 }
 0x11f   : > { %641 = vrot.lane.b32.xlu1 %v3620_v59, %s2525_s18  ;;  %639 = vrot.lane.b32.xlu0 %v3626_v4, %s2525_s18 }
 0x121   : > { %v4015_v44 = vpop.permute.xlu1 %529  ;;  %v4017_v14 = vpop.permute.xlu0 %527 }
 0x122   : > { %4994 = vst [vmem:[#allocation16_spill] sm:$0xff] %v4017_v14 }
 0x123   : > { %645 = vrot.lane.b32.xlu1 %v3640_v17, %s2525_s18  ;;  %643 = vrot.lane.b32.xlu0 %v3646_v49, %s2525_s18  ;;  %v4999_v17 = vlaneseq }
 0x125   : > { %v4023_v16 = vpop.permute.xlu1 %533  ;;  %v4025_v2 = vpop.permute.xlu0 %531  ;;  %v4040_v49 = vand.u32 127, %v4999_v17 }
 0x126   : > { %4995 = vst [vmem:[#allocation17_spill] sm:$0xff] %v4023_v16  ;;  %4996 = vst [vmem:[#allocation18_spill] sm:$0xff] %v4025_v2 }
 0x127   : > { %649 = vrot.lane.b32.xlu1 %v3660_v31, %s2525_s18  ;;  %647 = vrot.lane.b32.xlu0 %v3666_v15, %s2525_s18  ;;  %v4051_v31 = vadd.s32 128, %v4040_v49  ;;  %vm675_vm2 = vcmp.lt.s32.totalorder %v4040_v49, 127 }
 0x129   : > { %v4031_v59 = vpop.permute.xlu1 %537  ;;  %v4033_v4 = vpop.permute.xlu0 %535  ;;  %vm290_vm3 = vcmp.eq.s32.totalorder %v4051_v31, 255 }
 0x12a   : > { %4997 = vst [vmem:[#allocation19_spill] sm:$0xff] %v4031_v59  ;;  %4998 = vst [vmem:[#allocation20_spill] sm:$0xff] %v4033_v4  ;;  %v2283_v4 = vld [vmem:[%s2655_s4] sm:$0xff] }
 0x12b   : > { %653 = vrot.lane.b32.xlu1 %v3680_v34, %s2525_s18  ;;  %651 = vrot.lane.b32.xlu0 %v3686_v19, %s2525_s18 }
 0x12d   : > { %v4042_v2 = vpop.permute.xlu1 %541  ;;  %v4044_v16 = vpop.permute.xlu0 %539 }
 0x12e   : > { %5000 = vst [vmem:[#allocation21_spill] sm:$0xff] %v4042_v2  ;;  %5001 = vst [vmem:[#allocation22_spill] sm:$0xff] %v4044_v16  ;;  %v2282_v16 = vld [vmem:[%s2655_s4 + $0x18] sm:$0xff] }
 0x12f   : > { %657 = vrot.lane.b32.xlu1 %v3700_v42, %s2525_s18  ;;  %655 = vrot.lane.b32.xlu0 %v3706_v33, %s2525_s18 }
 0x131   : > { %v4053_v15 = vpop.permute.xlu1 %545  ;;  %v4055_v34 = vpop.permute.xlu0 %543 }
 0x132   : > { %5002 = vst [vmem:[#allocation23_spill] sm:$0xff] %v4053_v15  ;;  %5003 = vst [vmem:[#allocation29_spill] sm:$0xff] %v4055_v34  ;;  %v2281_v34 = vld [vmem:[%s2655_s4 + $0x10] sm:$0xff] }
 0x133   : > { %661 = vrot.lane.b32.xlu1 %v3720_v39, %s2525_s18  ;;  %659 = vrot.lane.b32.xlu0 %v3726_v45, %s2525_s18 }
 0x135   : > { %v550_v19 = vpop.permute.xlu1 %549  ;;  %v548_v42 = vpop.permute.xlu0 %547 }
 0x136   : > { %v677_v33 = vsel %vm675_vm2, %v3753_v56, %v550_v19  ;;  %v741_v17 = vsel %vm675_vm2, %v550_v19, %v3753_v56  ;;  %v676_v39 = vsel %vm675_vm2, %v3737_v40, %v548_v42  ;;  %v740_v45 = vsel %vm675_vm2, %v548_v42, %v3737_v40  ;;  %v2286_v42 = vld [vmem:[%s2655_s4 + $0x20] sm:$0xff] }
 0x137   : > { %v806_v15 = vsub.f32 %v677_v33, %v2281_v34  ;;  %v807_v2 = vsub.f32 %v741_v17, %v2282_v16  ;;  %v804_v59 = vsub.f32 %v676_v39, %v2283_v4  ;;  %v805_v14 = vsub.f32 %v740_v45, %v3204_v53  ;;  %665 = vrot.lane.b32.xlu1 %v3756_v29, %s2525_s18  ;;  %v2285_v34 = vld [vmem:[%s2655_s4 + $0x38] sm:$0xff]  ;;  %v2287_v17 = vld [vmem:[%s2655_s4 + $0x28] sm:$0xff] }
 0x138   : > { %663 = vrot.lane.b32.xlu0 %v3759_v23, %s2525_s18  ;;  %v5004_v23 = vld [vmem:[#allocation24_spill] sm:$0xff] }
 0x139   : > { %v939_v40 = vsel %vm290_vm3, 0.0, %v807_v2  ;;  %1066 = vst [vmem:[%s2710_s29 + $0x10] sm:$0xff] %v806_v15  ;;  %v937_v56 = vsel %vm290_vm3, 0.0, %v805_v14  ;;  %1064 = vst [vmem:[%s2710_s29] sm:$0xff] %v804_v59  ;;  %v554_v16 = vpop.permute.xlu1 %553  ;;  %v552_v4 = vpop.permute.xlu0 %551  ;;  %v2284_v59 = vld [vmem:[%s2655_s4 + $0x30] sm:$0xff] }
 0x13a   : > { %1067 = vst [vmem:[%s2710_s29 + $0x18] sm:$0xff] %v939_v40  ;;  %1065 = vst [vmem:[%s2710_s29 + $0x8] sm:$0xff] %v937_v56  ;;  %v679_v53 = vsel %vm675_vm2, %v3751_v62, %v554_v16  ;;  %v743_v29 = vsel %vm675_vm2, %v554_v16, %v3751_v62  ;;  %v678_v14 = vsel %vm675_vm2, %v5004_v23, %v552_v4  ;;  %v5005_v16 = vld [vmem:[#allocation25_spill] sm:$0xff] }
 0x13b   : > { %v742_v2 = vsel %vm675_vm2, %v552_v4, %v5004_v23  ;;  %v810_v15 = vsub.f32 %v679_v53, %v2284_v59  ;;  %v811_v19 = vsub.f32 %v743_v29, %v2285_v34  ;;  %v808_v33 = vsub.f32 %v678_v14, %v2286_v42  ;;  %669 = vrot.lane.b32.xlu1 %v3778_v54, %s2525_s18  ;;  %v5006_v4 = vld [vmem:[#allocation26_spill] sm:$0xff] }
 0x13c   : > { %v809_v62 = vsub.f32 %v742_v2, %v2287_v17  ;;  %667 = vrot.lane.b32.xlu0 %v3781_v47, %s2525_s18  ;;  %v2288_v23 = vld [vmem:[%s2655_s4 + $0x50] sm:$0xff]  ;;  %v2289_v2 = vld [vmem:[%s2655_s4 + $0x58] sm:$0xff] }
 0x13d   : > { %v943_v39 = vsel %vm290_vm3, 0.0, %v811_v19  ;;  %1070 = vst [vmem:[%s2710_s29 + $0x30] sm:$0xff] %v810_v15  ;;  %1068 = vst [vmem:[%s2710_s29 + $0x20] sm:$0xff] %v808_v33  ;;  %v558_v40 = vpop.permute.xlu1 %557  ;;  %v556_v56 = vpop.permute.xlu0 %555  ;;  %v2290_v15 = vld [vmem:[%s2655_s4 + $0x40] sm:$0xff]  ;;  %v2291_v19 = vld [vmem:[%s2655_s4 + $0x48] sm:$0xff] }
 0x13e   : > { %v941_v45 = vsel %vm290_vm3, 0.0, %v809_v62  ;;  %1071 = vst [vmem:[%s2710_s29 + $0x38] sm:$0xff] %v943_v39  ;;  %v681_v54 = vsel %vm675_vm2, %v5005_v16, %v558_v40  ;;  %v745_v47 = vsel %vm675_vm2, %v558_v40, %v5005_v16  ;;  %v680_v53 = vsel %vm675_vm2, %v5006_v4, %v556_v56  ;;  %v5008_v40 = vld [vmem:[#allocation28_spill] sm:$0xff] }
 0x13f   : > { %1069 = vst [vmem:[%s2710_s29 + $0x28] sm:$0xff] %v941_v45  ;;  %v744_v29 = vsel %vm675_vm2, %v556_v56, %v5006_v4  ;;  %v814_v14 = vsub.f32 %v681_v54, %v2288_v23  ;;  %v815_v59 = vsub.f32 %v745_v47, %v2289_v2  ;;  %v812_v34 = vsub.f32 %v680_v53, %v2290_v15  ;;  %v2292_v54 = vld [vmem:[%s2655_s4 + $0x70] sm:$0xff]  ;;  %v2293_v4 = vld [vmem:[%s2655_s4 + $0x78] sm:$0xff] }
 0x140   : > { %v813_v42 = vsub.f32 %v744_v29, %v2291_v19  ;;  %673 = vrot.lane.b32.xlu1 %v3802_v51, %s2525_s18  ;;  %671 = vrot.lane.b32.xlu0 %v3805_v38, %s2525_s18  ;;  %v5007_v51 = vld [vmem:[#allocation27_spill] sm:$0xff]  ;;  %v2294_v29 = vld [vmem:[%s2655_s4 + $0x60] sm:$0xff] }
 0x141   : > { %v947_v33 = vsel %vm290_vm3, 0.0, %v815_v59  ;;  %1074 = vst [vmem:[%s2710_s29 + $0x50] sm:$0xff] %v814_v14  ;;  %1072 = vst [vmem:[%s2710_s29 + $0x40] sm:$0xff] %v812_v34  ;;  %v562_v62 = vpop.permute.xlu1 %561  ;;  %v560_v39 = vpop.permute.xlu0 %559  ;;  %v2295_v14 = vld [vmem:[%s2655_s4 + $0x68] sm:$0xff] }
 0x142   : > { %v945_v17 = vsel %vm290_vm3, 0.0, %v813_v42  ;;  %1075 = vst [vmem:[%s2710_s29 + $0x58] sm:$0xff] %v947_v33  ;;  %v683_v38 = vsel %vm675_vm2, %v5007_v51, %v562_v62  ;;  %v747_v45 = vsel %vm675_vm2, %v562_v62, %v5007_v51  ;;  %v682_v56 = vsel %vm675_vm2, %v5008_v40, %v560_v39 }
 0x143   : > { %1073 = vst [vmem:[%s2710_s29 + $0x48] sm:$0xff] %v945_v17  ;;  %v746_v16 = vsel %vm675_vm2, %v560_v39, %v5008_v40  ;;  %v818_v47 = vsub.f32 %v683_v38, %v2292_v54  ;;  %v819_v53 = vsub.f32 %v747_v45, %v2293_v4  ;;  %v816_v23 = vsub.f32 %v682_v56, %v2294_v29  ;;  %v2296_v39 = vld [vmem:[%s2655_s4 + $0x90] sm:$0xff]  ;;  %v2297_v38 = vld [vmem:[%s2655_s4 + $0x98] sm:$0xff]  ;;  %v2298_v40 = vld [vmem:[%s2655_s4 + $0x80] sm:$0xff] }
 0x144   : > { %v817_v2 = vsub.f32 %v746_v16, %v2295_v14  ;;  %v2299_v16 = vld [vmem:[%s2655_s4 + $0x88] sm:$0xff] }
 0x145   : > { %v951_v59 = vsel %vm290_vm3, 0.0, %v819_v53  ;;  %1078 = vst [vmem:[%s2710_s29 + $0x70] sm:$0xff] %v818_v47  ;;  %1076 = vst [vmem:[%s2710_s29 + $0x60] sm:$0xff] %v816_v23  ;;  %v566_v34 = vpop.permute.xlu1 %565  ;;  %v564_v19 = vpop.permute.xlu0 %563 }
 0x146   : > { %v949_v15 = vsel %vm290_vm3, 0.0, %v817_v2  ;;  %1079 = vst [vmem:[%s2710_s29 + $0x78] sm:$0xff] %v951_v59  ;;  %v685_v42 = vsel %vm675_vm2, %v3823_v5, %v566_v34  ;;  %v749_v33 = vsel %vm675_vm2, %v566_v34, %v3823_v5  ;;  %v684_v17 = vsel %vm675_vm2, %v3825_v8, %v564_v19  ;;  %v2300_v2 = vld [vmem:[%s2655_s4 + $0xb0] sm:$0xff] }
 0x147   : > { %1077 = vst [vmem:[%s2710_s29 + $0x68] sm:$0xff] %v949_v15  ;;  %v748_v62 = vsel %vm675_vm2, %v564_v19, %v3825_v8  ;;  %v822_v51 = vsub.f32 %v685_v42, %v2296_v39  ;;  %v823_v45 = vsub.f32 %v749_v33, %v2297_v38  ;;  %v820_v56 = vsub.f32 %v684_v17, %v2298_v40  ;;  %v2301_v15 = vld [vmem:[%s2655_s4 + $0xb8] sm:$0xff]  ;;  %v2302_v19 = vld [vmem:[%s2655_s4 + $0xa0] sm:$0xff]  ;;  %v2303_v33 = vld [vmem:[%s2655_s4 + $0xa8] sm:$0xff] }
 0x148   : > { %v821_v5 = vsub.f32 %v748_v62, %v2299_v16 }
 0x149   : > { %v955_v54 = vsel %vm290_vm3, 0.0, %v823_v45  ;;  %1082 = vst [vmem:[%s2710_s29 + $0x90] sm:$0xff] %v822_v51  ;;  %1080 = vst [vmem:[%s2710_s29 + $0x80] sm:$0xff] %v820_v56  ;;  %v570_v8 = vpop.permute.xlu1 %569  ;;  %v568_v4 = vpop.permute.xlu0 %567  ;;  %v2304_v56 = vld [vmem:[%s2655_s4 + $0xd0] sm:$0xff] }
 0x14a   : > { %v953_v47 = vsel %vm290_vm3, 0.0, %v821_v5  ;;  %1083 = vst [vmem:[%s2710_s29 + $0x98] sm:$0xff] %v955_v54  ;;  %v687_v53 = vsel %vm675_vm2, %v3839_v55, %v570_v8  ;;  %v751_v29 = vsel %vm675_vm2, %v570_v8, %v3839_v55  ;;  %v686_v23 = vsel %vm675_vm2, %v3841_v36, %v568_v4  ;;  %v2305_v5 = vld [vmem:[%s2655_s4 + $0xd8] sm:$0xff] }
 0x14b   : > { %1081 = vst [vmem:[%s2710_s29 + $0x88] sm:$0xff] %v953_v47  ;;  %v750_v14 = vsel %vm675_vm2, %v568_v4, %v3841_v36  ;;  %v826_v59 = vsub.f32 %v687_v53, %v2300_v2  ;;  %v827_v34 = vsub.f32 %v751_v29, %v2301_v15  ;;  %v824_v42 = vsub.f32 %v686_v23, %v2302_v19  ;;  %v2306_v47 = vld [vmem:[%s2655_s4 + $0xc0] sm:$0xff]  ;;  %v2307_v4 = vld [vmem:[%s2655_s4 + $0xc8] sm:$0xff] }
 0x14c   : > { %v825_v55 = vsub.f32 %v750_v14, %v2303_v33 }
 0x14d   : > { %v959_v17 = vsel %vm290_vm3, 0.0, %v827_v34  ;;  %1086 = vst [vmem:[%s2710_s29 + $0xb0] sm:$0xff] %v826_v59  ;;  %1084 = vst [vmem:[%s2710_s29 + $0xa0] sm:$0xff] %v824_v42  ;;  %v574_v36 = vpop.permute.xlu1 %573  ;;  %v572_v39 = vpop.permute.xlu0 %571  ;;  %v2308_v34 = vld [vmem:[%s2655_s4 + $0xf0] sm:$0xff]  ;;  %v2309_v42 = vld [vmem:[%s2655_s4 + $0xf8] sm:$0xff] }
 0x14e   : > { %v957_v62 = vsel %vm290_vm3, 0.0, %v825_v55  ;;  %1087 = vst [vmem:[%s2710_s29 + $0xb8] sm:$0xff] %v959_v17  ;;  %v689_v51 = vsel %vm675_vm2, %v3847_v30, %v574_v36  ;;  %v753_v38 = vsel %vm675_vm2, %v574_v36, %v3847_v30  ;;  %v688_v45 = vsel %vm675_vm2, %v3849_v41, %v572_v39  ;;  %v2310_v55 = vld [vmem:[%s2655_s4 + $0xe0] sm:$0xff] }
 0x14f   : > { %1085 = vst [vmem:[%s2710_s29 + $0xa8] sm:$0xff] %v957_v62  ;;  %v752_v40 = vsel %vm675_vm2, %v572_v39, %v3849_v41  ;;  %v830_v16 = vsub.f32 %v689_v51, %v2304_v56  ;;  %v831_v54 = vsub.f32 %v753_v38, %v2305_v5  ;;  %v828_v8 = vsub.f32 %v688_v45, %v2306_v47  ;;  %v2311_v62 = vld [vmem:[%s2655_s4 + $0xe8] sm:$0xff]  ;;  %v5009_v38 = vld [vmem:[#allocation8_spill] sm:$0xff]  ;;  %v2312_v5 = vld [vmem:[%s2655_s4 + $0x110] sm:$0xff] }
 0x150   : > { %v829_v30 = vsub.f32 %v752_v40, %v2307_v4  ;;  %v2313_v47 = vld [vmem:[%s2655_s4 + $0x118] sm:$0xff]  ;;  %v2314_v4 = vld [vmem:[%s2655_s4 + $0x100] sm:$0xff] }
 0x151   : > { %v963_v53 = vsel %vm290_vm3, 0.0, %v831_v54  ;;  %1090 = vst [vmem:[%s2710_s29 + $0xd0] sm:$0xff] %v830_v16  ;;  %1088 = vst [vmem:[%s2710_s29 + $0xc0] sm:$0xff] %v828_v8  ;;  %v578_v41 = vpop.permute.xlu1 %577  ;;  %v576_v23 = vpop.permute.xlu0 %575 }
 0x152   : > { %v961_v29 = vsel %vm290_vm3, 0.0, %v829_v30  ;;  %1091 = vst [vmem:[%s2710_s29 + $0xd8] sm:$0xff] %v963_v53  ;;  %v691_v14 = vsel %vm675_vm2, %v3855_v20, %v578_v41  ;;  %v755_v2 = vsel %vm675_vm2, %v578_v41, %v3855_v20  ;;  %v690_v59 = vsel %vm675_vm2, %v3857_v26, %v576_v23  ;;  %v2315_v53 = vld [vmem:[%s2655_s4 + $0x108] sm:$0xff] }
 0x153   : > { %1089 = vst [vmem:[%s2710_s29 + $0xc8] sm:$0xff] %v961_v29  ;;  %v754_v15 = vsel %vm675_vm2, %v576_v23, %v3857_v26  ;;  %v834_v19 = vsub.f32 %v691_v14, %v2308_v34  ;;  %v835_v33 = vsub.f32 %v755_v2, %v2309_v42  ;;  %v832_v17 = vsub.f32 %v690_v59, %v2310_v55  ;;  %v5010_v2 = vld [vmem:[#allocation9_spill] sm:$0xff]  ;;  %v2316_v42 = vld [vmem:[%s2655_s4 + $0x130] sm:$0xff]  ;;  %v2317_v55 = vld [vmem:[%s2655_s4 + $0x138] sm:$0xff] }
 0x154   : > { %v833_v20 = vsub.f32 %v754_v15, %v2311_v62  ;;  %v2318_v62 = vld [vmem:[%s2655_s4 + $0x120] sm:$0xff] }
 0x155   : > { %v967_v36 = vsel %vm290_vm3, 0.0, %v835_v33  ;;  %1094 = vst [vmem:[%s2710_s29 + $0xf0] sm:$0xff] %v834_v19  ;;  %1092 = vst [vmem:[%s2710_s29 + $0xe0] sm:$0xff] %v832_v17  ;;  %v582_v26 = vpop.permute.xlu1 %581  ;;  %v580_v51 = vpop.permute.xlu0 %579 }
 0x156   : > { %v965_v39 = vsel %vm290_vm3, 0.0, %v833_v20  ;;  %1095 = vst [vmem:[%s2710_s29 + $0xf8] sm:$0xff] %v967_v36  ;;  %v693_v45 = vsel %vm675_vm2, %v5009_v38, %v582_v26  ;;  %v757_v40 = vsel %vm675_vm2, %v582_v26, %v5009_v38  ;;  %v692_v56 = vsel %vm675_vm2, %v3865_v25, %v580_v51  ;;  %v2319_v36 = vld [vmem:[%s2655_s4 + $0x128] sm:$0xff] }
 0x157   : > { %1093 = vst [vmem:[%s2710_s29 + $0xe8] sm:$0xff] %v965_v39  ;;  %v756_v16 = vsel %vm675_vm2, %v580_v51, %v3865_v25  ;;  %v838_v54 = vsub.f32 %v693_v45, %v2312_v5  ;;  %v839_v8 = vsub.f32 %v757_v40, %v2313_v47  ;;  %v836_v30 = vsub.f32 %v692_v56, %v2314_v4  ;;  %v2320_v5 = vld [vmem:[%s2655_s4 + $0x150] sm:$0xff]  ;;  %v2321_v47 = vld [vmem:[%s2655_s4 + $0x158] sm:$0xff]  ;;  %v2322_v4 = vld [vmem:[%s2655_s4 + $0x140] sm:$0xff] }
 0x158   : > { %v837_v29 = vsub.f32 %v756_v16, %v2315_v53  ;;  %v2323_v53 = vld [vmem:[%s2655_s4 + $0x148] sm:$0xff] }
 0x159   : > { %v971_v41 = vsel %vm290_vm3, 0.0, %v839_v8  ;;  %1098 = vst [vmem:[%s2710_s29 + $0x110] sm:$0xff] %v838_v54  ;;  %1096 = vst [vmem:[%s2710_s29 + $0x100] sm:$0xff] %v836_v30  ;;  %v586_v25 = vpop.permute.xlu1 %585  ;;  %v584_v14 = vpop.permute.xlu0 %583 }
 0x15a   : > { %v969_v23 = vsel %vm290_vm3, 0.0, %v837_v29  ;;  %1099 = vst [vmem:[%s2710_s29 + $0x118] sm:$0xff] %v971_v41  ;;  %v695_v59 = vsel %vm675_vm2, %v5010_v2, %v586_v25  ;;  %v759_v15 = vsel %vm675_vm2, %v586_v25, %v5010_v2  ;;  %v694_v34 = vsel %vm675_vm2, %v3873_v28, %v584_v14  ;;  %v5011_v25 = vld [vmem:[#allocation10_spill] sm:$0xff] }
 0x15b   : > { %1097 = vst [vmem:[%s2710_s29 + $0x108] sm:$0xff] %v969_v23  ;;  %v758_v19 = vsel %vm675_vm2, %v584_v14, %v3873_v28  ;;  %v842_v33 = vsub.f32 %v695_v59, %v2316_v42  ;;  %v843_v17 = vsub.f32 %v759_v15, %v2317_v55  ;;  %v840_v20 = vsub.f32 %v694_v34, %v2318_v62  ;;  %v5012_v59 = vld [vmem:[#allocation11_spill] sm:$0xff] }
 0x15c   : > { %v841_v39 = vsub.f32 %v758_v19, %v2319_v36  ;;  %v2324_v19 = vld [vmem:[%s2655_s4 + $0x170] sm:$0xff] }
 0x15d   : > { %v975_v26 = vsel %vm290_vm3, 0.0, %v843_v17  ;;  %1102 = vst [vmem:[%s2710_s29 + $0x130] sm:$0xff] %v842_v33  ;;  %1100 = vst [vmem:[%s2710_s29 + $0x120] sm:$0xff] %v840_v20  ;;  %v590_v28 = vpop.permute.xlu1 %589  ;;  %v588_v38 = vpop.permute.xlu0 %587  ;;  %v2325_v33 = vld [vmem:[%s2655_s4 + $0x178] sm:$0xff]  ;;  %v2326_v17 = vld [vmem:[%s2655_s4 + $0x160] sm:$0xff] }
 0x15e   : > { %v973_v51 = vsel %vm290_vm3, 0.0, %v841_v39  ;;  %1103 = vst [vmem:[%s2710_s29 + $0x138] sm:$0xff] %v975_v26  ;;  %v697_v45 = vsel %vm675_vm2, %v3879_v9, %v590_v28  ;;  %v761_v40 = vsel %vm675_vm2, %v590_v28, %v3879_v9  ;;  %v696_v56 = vsel %vm675_vm2, %v3881_v60, %v588_v38  ;;  %v2327_v20 = vld [vmem:[%s2655_s4 + $0x168] sm:$0xff] }
 0x15f   : > { %1101 = vst [vmem:[%s2710_s29 + $0x128] sm:$0xff] %v973_v51  ;;  %v760_v16 = vsel %vm675_vm2, %v588_v38, %v3881_v60  ;;  %v846_v54 = vsub.f32 %v697_v45, %v2320_v5  ;;  %v847_v8 = vsub.f32 %v761_v40, %v2321_v47  ;;  %v844_v30 = vsub.f32 %v696_v56, %v2322_v4  ;;  %v5013_v38 = vld [vmem:[#allocation12_spill] sm:$0xff]  ;;  %v2328_v5 = vld [vmem:[%s2655_s4 + $0x190] sm:$0xff]  ;;  %v2329_v47 = vld [vmem:[%s2655_s4 + $0x198] sm:$0xff] }
 0x160   : > { %v845_v9 = vsub.f32 %v760_v16, %v2323_v53  ;;  %v2330_v4 = vld [vmem:[%s2655_s4 + $0x180] sm:$0xff]  ;;  %v2331_v53 = vld [vmem:[%s2655_s4 + $0x188] sm:$0xff] }
 0x161   : > { %v979_v29 = vsel %vm290_vm3, 0.0, %v847_v8  ;;  %1106 = vst [vmem:[%s2710_s29 + $0x150] sm:$0xff] %v846_v54  ;;  %1104 = vst [vmem:[%s2710_s29 + $0x140] sm:$0xff] %v844_v30  ;;  %v594_v60 = vpop.permute.xlu1 %593  ;;  %v592_v23 = vpop.permute.xlu0 %591 }
 0x162   : > { %v977_v41 = vsel %vm290_vm3, 0.0, %v845_v9  ;;  %1107 = vst [vmem:[%s2710_s29 + $0x158] sm:$0xff] %v979_v29  ;;  %v699_v14 = vsel %vm675_vm2, %v5011_v25, %v594_v60  ;;  %v763_v2 = vsel %vm675_vm2, %v594_v60, %v5011_v25  ;;  %v698_v15 = vsel %vm675_vm2, %v5012_v59, %v592_v23 }
 0x163   : > { %1105 = vst [vmem:[%s2710_s29 + $0x148] sm:$0xff] %v977_v41  ;;  %v762_v34 = vsel %vm675_vm2, %v592_v23, %v5012_v59  ;;  %v850_v42 = vsub.f32 %v699_v14, %v2324_v19  ;;  %v851_v55 = vsub.f32 %v763_v2, %v2325_v33  ;;  %v848_v62 = vsub.f32 %v698_v15, %v2326_v17  ;;  %v5014_v23 = vld [vmem:[#allocation13_spill] sm:$0xff]  ;;  %v2332_v15 = vld [vmem:[%s2655_s4 + $0x1b0] sm:$0xff]  ;;  %v2333_v19 = vld [vmem:[%s2655_s4 + $0x1b8] sm:$0xff] }
 0x164   : > { %v849_v36 = vsub.f32 %v762_v34, %v2327_v20  ;;  %v2334_v33 = vld [vmem:[%s2655_s4 + $0x1a0] sm:$0xff]  ;;  %v2335_v17 = vld [vmem:[%s2655_s4 + $0x1a8] sm:$0xff] }
 0x165   : > { %v983_v39 = vsel %vm290_vm3, 0.0, %v851_v55  ;;  %1110 = vst [vmem:[%s2710_s29 + $0x170] sm:$0xff] %v850_v42  ;;  %1108 = vst [vmem:[%s2710_s29 + $0x160] sm:$0xff] %v848_v62  ;;  %v598_v51 = vpop.permute.xlu1 %597  ;;  %v596_v28 = vpop.permute.xlu0 %595 }
 0x166   : > { %v981_v26 = vsel %vm290_vm3, 0.0, %v849_v36  ;;  %1111 = vst [vmem:[%s2710_s29 + $0x178] sm:$0xff] %v983_v39  ;;  %v701_v45 = vsel %vm675_vm2, %v5013_v38, %v598_v51  ;;  %v765_v40 = vsel %vm675_vm2, %v598_v51, %v5013_v38  ;;  %v700_v56 = vsel %vm675_vm2, %v3897_v61, %v596_v28 }
 0x167   : > { %1109 = vst [vmem:[%s2710_s29 + $0x168] sm:$0xff] %v981_v26  ;;  %v764_v16 = vsel %vm675_vm2, %v596_v28, %v3897_v61  ;;  %v854_v54 = vsub.f32 %v701_v45, %v2328_v5  ;;  %v855_v8 = vsub.f32 %v765_v40, %v2329_v47  ;;  %v852_v30 = vsub.f32 %v700_v56, %v2330_v4  ;;  %v5015_v26 = vld [vmem:[#allocation14_spill] sm:$0xff] }
 0x168   : > { %v853_v9 = vsub.f32 %v764_v16, %v2331_v53  ;;  %v2336_v40 = vld [vmem:[%s2655_s4 + $0x1d0] sm:$0xff]  ;;  %v2337_v16 = vld [vmem:[%s2655_s4 + $0x1d8] sm:$0xff] }
 0x169   : > { %v987_v29 = vsel %vm290_vm3, 0.0, %v855_v8  ;;  %1114 = vst [vmem:[%s2710_s29 + $0x190] sm:$0xff] %v854_v54  ;;  %1112 = vst [vmem:[%s2710_s29 + $0x180] sm:$0xff] %v852_v30  ;;  %v602_v61 = vpop.permute.xlu1 %601  ;;  %v600_v60 = vpop.permute.xlu0 %599  ;;  %v2338_v54 = vld [vmem:[%s2655_s4 + $0x1c0] sm:$0xff]  ;;  %v2339_v8 = vld [vmem:[%s2655_s4 + $0x1c8] sm:$0xff] }
 0x16a   : > { %v985_v41 = vsel %vm290_vm3, 0.0, %v853_v9  ;;  %1115 = vst [vmem:[%s2710_s29 + $0x198] sm:$0xff] %v987_v29  ;;  %v703_v25 = vsel %vm675_vm2, %v5014_v23, %v602_v61  ;;  %v767_v14 = vsel %vm675_vm2, %v602_v61, %v5014_v23  ;;  %v702_v2 = vsel %vm675_vm2, %v3905_v10, %v600_v60  ;;  %v2340_v23 = vld [vmem:[%s2655_s4 + $0x1f0] sm:$0xff] }
 0x16b   : > { %1113 = vst [vmem:[%s2710_s29 + $0x188] sm:$0xff] %v985_v41  ;;  %v766_v59 = vsel %vm675_vm2, %v600_v60, %v3905_v10  ;;  %v858_v34 = vsub.f32 %v703_v25, %v2332_v15  ;;  %v859_v42 = vsub.f32 %v767_v14, %v2333_v19  ;;  %v856_v55 = vsub.f32 %v702_v2, %v2334_v33  ;;  %v2341_v14 = vld [vmem:[%s2655_s4 + $0x1f8] sm:$0xff] }
 0x16c   : > { %v857_v62 = vsub.f32 %v766_v59, %v2335_v17  ;;  %v2342_v59 = vld [vmem:[%s2655_s4 + $0x1e0] sm:$0xff] }
 0x16d   : > { %v991_v20 = vsel %vm290_vm3, 0.0, %v859_v42  ;;  %1118 = vst [vmem:[%s2710_s29 + $0x1b0] sm:$0xff] %v858_v34  ;;  %1116 = vst [vmem:[%s2710_s29 + $0x1a0] sm:$0xff] %v856_v55  ;;  %v606_v10 = vpop.permute.xlu1 %605  ;;  %v604_v39 = vpop.permute.xlu0 %603  ;;  %v2343_v34 = vld [vmem:[%s2655_s4 + $0x1e8] sm:$0xff] }
 0x16e   : > { %v989_v36 = vsel %vm290_vm3, 0.0, %v857_v62  ;;  %1119 = vst [vmem:[%s2710_s29 + $0x1b8] sm:$0xff] %v991_v20  ;;  %v705_v51 = vsel %vm675_vm2, %v5015_v26, %v606_v10  ;;  %v769_v28 = vsel %vm675_vm2, %v606_v10, %v5015_v26  ;;  %v704_v38 = vsel %vm675_vm2, %v3913_v50, %v604_v39 }
 0x16f   : > { %1117 = vst [vmem:[%s2710_s29 + $0x1a8] sm:$0xff] %v989_v36  ;;  %v768_v45 = vsel %vm675_vm2, %v604_v39, %v3913_v50  ;;  %v862_v56 = vsub.f32 %v705_v51, %v2336_v40  ;;  %v863_v5 = vsub.f32 %v769_v28, %v2337_v16  ;;  %v860_v47 = vsub.f32 %v704_v38, %v2338_v54  ;;  %v2344_v36 = vld [vmem:[%s2655_s4 + $0x210] sm:$0xff]  ;;  %v2345_v39 = vld [vmem:[%s2655_s4 + $0x218] sm:$0xff]  ;;  %v2346_v51 = vld [vmem:[%s2655_s4 + $0x200] sm:$0xff] }
 0x170   : > { %v861_v4 = vsub.f32 %v768_v45, %v2339_v8  ;;  %v2347_v38 = vld [vmem:[%s2655_s4 + $0x208] sm:$0xff]  ;;  %v5016_v16 = vld [vmem:[#allocation15_spill] sm:$0xff] }
 0x171   : > { %v995_v30 = vsel %vm290_vm3, 0.0, %v863_v5  ;;  %1122 = vst [vmem:[%s2710_s29 + $0x1d0] sm:$0xff] %v862_v56  ;;  %1120 = vst [vmem:[%s2710_s29 + $0x1c0] sm:$0xff] %v860_v47  ;;  %v610_v50 = vpop.permute.xlu1 %609  ;;  %v608_v9 = vpop.permute.xlu0 %607 }
 0x172   : > { %v993_v53 = vsel %vm290_vm3, 0.0, %v861_v4  ;;  %1123 = vst [vmem:[%s2710_s29 + $0x1d8] sm:$0xff] %v995_v30  ;;  %v707_v29 = vsel %vm675_vm2, %v3919_v46, %v610_v50  ;;  %v771_v41 = vsel %vm675_vm2, %v610_v50, %v3919_v46  ;;  %v706_v61 = vsel %vm675_vm2, %v3921_v1, %v608_v9  ;;  %v2348_v4 = vld [vmem:[%s2655_s4 + $0x230] sm:$0xff] }
 0x173   : > { %1121 = vst [vmem:[%s2710_s29 + $0x1c8] sm:$0xff] %v993_v53  ;;  %v770_v60 = vsel %vm675_vm2, %v608_v9, %v3921_v1  ;;  %v866_v25 = vsub.f32 %v707_v29, %v2340_v23  ;;  %v867_v2 = vsub.f32 %v771_v41, %v2341_v14  ;;  %v864_v15 = vsub.f32 %v706_v61, %v2342_v59  ;;  %v2349_v53 = vld [vmem:[%s2655_s4 + $0x238] sm:$0xff]  ;;  %v2350_v9 = vld [vmem:[%s2655_s4 + $0x220] sm:$0xff]  ;;  %v2351_v41 = vld [vmem:[%s2655_s4 + $0x228] sm:$0xff] }
 0x174   : > { %v865_v46 = vsub.f32 %v770_v60, %v2343_v34  ;;  %v2352_v34 = vld [vmem:[%s2655_s4 + $0x250] sm:$0xff] }
 0x175   : > { %v999_v19 = vsel %vm290_vm3, 0.0, %v867_v2  ;;  %1126 = vst [vmem:[%s2710_s29 + $0x1f0] sm:$0xff] %v866_v25  ;;  %1124 = vst [vmem:[%s2710_s29 + $0x1e0] sm:$0xff] %v864_v15  ;;  %v614_v1 = vpop.permute.xlu1 %613  ;;  %v612_v33 = vpop.permute.xlu0 %611 }
 0x176   : > { %v997_v42 = vsel %vm290_vm3, 0.0, %v865_v46  ;;  %1127 = vst [vmem:[%s2710_s29 + $0x1f8] sm:$0xff] %v999_v19  ;;  %v709_v55 = vsel %vm675_vm2, %v3927_v12, %v614_v1  ;;  %v773_v17 = vsel %vm675_vm2, %v614_v1, %v3927_v12  ;;  %v708_v62 = vsel %vm675_vm2, %v3929_v13, %v612_v33  ;;  %v2353_v19 = vld [vmem:[%s2655_s4 + $0x258] sm:$0xff]  ;;  %v2354_v1 = vld [vmem:[%s2655_s4 + $0x240] sm:$0xff] }
 0x177   : > { %1125 = vst [vmem:[%s2710_s29 + $0x1e8] sm:$0xff] %v997_v42  ;;  %v772_v20 = vsel %vm675_vm2, %v612_v33, %v3929_v13  ;;  %v870_v10 = vsub.f32 %v709_v55, %v2344_v36  ;;  %v871_v26 = vsub.f32 %v773_v17, %v2345_v39  ;;  %v868_v28 = vsub.f32 %v708_v62, %v2346_v51  ;;  %v2355_v55 = vld [vmem:[%s2655_s4 + $0x248] sm:$0xff]  ;;  %v2356_v51 = vld [vmem:[%s2655_s4 + $0x270] sm:$0xff] }
 0x178   : > { %v869_v12 = vsub.f32 %v772_v20, %v2347_v38  ;;  %v2357_v38 = vld [vmem:[%s2655_s4 + $0x278] sm:$0xff] }
 0x179   : > { %v1003_v45 = vsel %vm290_vm3, 0.0, %v871_v26  ;;  %1130 = vst [vmem:[%s2710_s29 + $0x210] sm:$0xff] %v870_v10  ;;  %1128 = vst [vmem:[%s2710_s29 + $0x200] sm:$0xff] %v868_v28  ;;  %v618_v13 = vpop.permute.xlu1 %617  ;;  %v616_v56 = vpop.permute.xlu0 %615 }
 0x17a   : > { %v1001_v40 = vsel %vm290_vm3, 0.0, %v869_v12  ;;  %1131 = vst [vmem:[%s2710_s29 + $0x218] sm:$0xff] %v1003_v45  ;;  %v711_v5 = vsel %vm675_vm2, %v5016_v16, %v618_v13  ;;  %v775_v54 = vsel %vm675_vm2, %v618_v13, %v5016_v16  ;;  %v710_v47 = vsel %vm675_vm2, %v3937_v32, %v616_v56  ;;  %v2358_v45 = vld [vmem:[%s2655_s4 + $0x260] sm:$0xff]  ;;  %v2359_v13 = vld [vmem:[%s2655_s4 + $0x268] sm:$0xff] }
 0x17b   : > { %1129 = vst [vmem:[%s2710_s29 + $0x208] sm:$0xff] %v1001_v40  ;;  %v774_v8 = vsel %vm675_vm2, %v616_v56, %v3937_v32  ;;  %v874_v30 = vsub.f32 %v711_v5, %v2348_v4  ;;  %v875_v50 = vsub.f32 %v775_v54, %v2349_v53  ;;  %v872_v29 = vsub.f32 %v710_v47, %v2350_v9 }
 0x17c   : > { %v873_v61 = vsub.f32 %v774_v8, %v2351_v41 }
 0x17d   : > { %v1007_v60 = vsel %vm290_vm3, 0.0, %v875_v50  ;;  %1134 = vst [vmem:[%s2710_s29 + $0x230] sm:$0xff] %v874_v30  ;;  %1132 = vst [vmem:[%s2710_s29 + $0x220] sm:$0xff] %v872_v29  ;;  %v622_v32 = vpop.permute.xlu1 %621  ;;  %v620_v25 = vpop.permute.xlu0 %619  ;;  %v2360_v30 = vld [vmem:[%s2655_s4 + $0x290] sm:$0xff]  ;;  %v2361_v50 = vld [vmem:[%s2655_s4 + $0x298] sm:$0xff] }
 0x17e   : > { %v1005_v23 = vsel %vm290_vm3, 0.0, %v873_v61  ;;  %1135 = vst [vmem:[%s2710_s29 + $0x238] sm:$0xff] %v1007_v60  ;;  %v713_v14 = vsel %vm675_vm2, %v3943_v0, %v622_v32  ;;  %v777_v2 = vsel %vm675_vm2, %v622_v32, %v3943_v0  ;;  %v712_v59 = vsel %vm675_vm2, %v3945_v57, %v620_v25  ;;  %v2362_v29 = vld [vmem:[%s2655_s4 + $0x280] sm:$0xff]  ;;  %v2363_v61 = vld [vmem:[%s2655_s4 + $0x288] sm:$0xff] }
 0x17f   : > { %1133 = vst [vmem:[%s2710_s29 + $0x228] sm:$0xff] %v1005_v23  ;;  %v776_v15 = vsel %vm675_vm2, %v620_v25, %v3945_v57  ;;  %v878_v46 = vsub.f32 %v713_v14, %v2352_v34  ;;  %v879_v42 = vsub.f32 %v777_v2, %v2353_v19  ;;  %v876_v33 = vsub.f32 %v712_v59, %v2354_v1 }
 0x180   : > { %v877_v0 = vsub.f32 %v776_v15, %v2355_v55  ;;  %v2364_v15 = vld [vmem:[%s2655_s4 + $0x2b0] sm:$0xff] }
 0x181   : > { %v1011_v17 = vsel %vm290_vm3, 0.0, %v879_v42  ;;  %1138 = vst [vmem:[%s2710_s29 + $0x250] sm:$0xff] %v878_v46  ;;  %1136 = vst [vmem:[%s2710_s29 + $0x240] sm:$0xff] %v876_v33  ;;  %v626_v57 = vpop.permute.xlu1 %625  ;;  %v624_v20 = vpop.permute.xlu0 %623  ;;  %v2365_v46 = vld [vmem:[%s2655_s4 + $0x2b8] sm:$0xff]  ;;  %v2366_v42 = vld [vmem:[%s2655_s4 + $0x2a0] sm:$0xff] }
 0x182   : > { %v1009_v62 = vsel %vm290_vm3, 0.0, %v877_v0  ;;  %1139 = vst [vmem:[%s2710_s29 + $0x258] sm:$0xff] %v1011_v17  ;;  %v715_v36 = vsel %vm675_vm2, %v3951_v63, %v626_v57  ;;  %v779_v10 = vsel %vm675_vm2, %v626_v57, %v3951_v63  ;;  %v714_v39 = vsel %vm675_vm2, %v3953_v11, %v624_v20  ;;  %v2367_v33 = vld [vmem:[%s2655_s4 + $0x2a8] sm:$0xff] }
 0x183   : > { %1137 = vst [vmem:[%s2710_s29 + $0x248] sm:$0xff] %v1009_v62  ;;  %v778_v26 = vsel %vm675_vm2, %v624_v20, %v3953_v11  ;;  %v882_v28 = vsub.f32 %v715_v36, %v2356_v51  ;;  %v883_v12 = vsub.f32 %v779_v10, %v2357_v38  ;;  %v880_v40 = vsub.f32 %v714_v39, %v2358_v45  ;;  %v2368_v10 = vld [vmem:[%s2655_s4 + $0x2d0] sm:$0xff] }
 0x184   : > { %v881_v63 = vsub.f32 %v778_v26, %v2359_v13  ;;  %v2369_v26 = vld [vmem:[%s2655_s4 + $0x2d8] sm:$0xff] }
 0x185   : > { %v1015_v56 = vsel %vm290_vm3, 0.0, %v883_v12  ;;  %1142 = vst [vmem:[%s2710_s29 + $0x270] sm:$0xff] %v882_v28  ;;  %1140 = vst [vmem:[%s2710_s29 + $0x260] sm:$0xff] %v880_v40  ;;  %v630_v11 = vpop.permute.xlu1 %629  ;;  %v628_v5 = vpop.permute.xlu0 %627  ;;  %v2370_v28 = vld [vmem:[%s2655_s4 + $0x2c0] sm:$0xff]  ;;  %v2371_v12 = vld [vmem:[%s2655_s4 + $0x2c8] sm:$0xff] }
 0x186   : > { %v1013_v16 = vsel %vm290_vm3, 0.0, %v881_v63  ;;  %1143 = vst [vmem:[%s2710_s29 + $0x278] sm:$0xff] %v1015_v56  ;;  %v717_v54 = vsel %vm675_vm2, %v3959_v43, %v630_v11  ;;  %v781_v47 = vsel %vm675_vm2, %v630_v11, %v3959_v43  ;;  %v716_v8 = vsel %vm675_vm2, %v3961_v3, %v628_v5 }
 0x187   : > { %1141 = vst [vmem:[%s2710_s29 + $0x268] sm:$0xff] %v1013_v16  ;;  %v780_v4 = vsel %vm675_vm2, %v628_v5, %v3961_v3  ;;  %v886_v53 = vsub.f32 %v717_v54, %v2360_v30  ;;  %v887_v9 = vsub.f32 %v781_v47, %v2361_v50  ;;  %v884_v41 = vsub.f32 %v716_v8, %v2362_v29  ;;  %v2372_v5 = vld [vmem:[%s2655_s4 + $0x2f0] sm:$0xff]  ;;  %v2373_v47 = vld [vmem:[%s2655_s4 + $0x2f8] sm:$0xff] }
 0x188   : > { %v885_v43 = vsub.f32 %v780_v4, %v2363_v61  ;;  %v2374_v4 = vld [vmem:[%s2655_s4 + $0x2e0] sm:$0xff] }
 0x189   : > { %v1019_v60 = vsel %vm290_vm3, 0.0, %v887_v9  ;;  %1146 = vst [vmem:[%s2710_s29 + $0x290] sm:$0xff] %v886_v53  ;;  %1144 = vst [vmem:[%s2710_s29 + $0x280] sm:$0xff] %v884_v41  ;;  %v634_v3 = vpop.permute.xlu1 %633  ;;  %v632_v32 = vpop.permute.xlu0 %631  ;;  %v2375_v53 = vld [vmem:[%s2655_s4 + $0x2e8] sm:$0xff] }
 0x18a   : > { %v1017_v23 = vsel %vm290_vm3, 0.0, %v885_v43  ;;  %1147 = vst [vmem:[%s2710_s29 + $0x298] sm:$0xff] %v1019_v60  ;;  %v719_v25 = vsel %vm675_vm2, %v3967_v58, %v634_v3  ;;  %v783_v14 = vsel %vm675_vm2, %v634_v3, %v3967_v58  ;;  %v718_v2 = vsel %vm675_vm2, %v3969_v48, %v632_v32 }
 0x18b   : > { %1145 = vst [vmem:[%s2710_s29 + $0x288] sm:$0xff] %v1017_v23  ;;  %v782_v59 = vsel %vm675_vm2, %v632_v32, %v3969_v48  ;;  %v890_v34 = vsub.f32 %v719_v25, %v2364_v15  ;;  %v891_v19 = vsub.f32 %v783_v14, %v2365_v46  ;;  %v888_v1 = vsub.f32 %v718_v2, %v2366_v42  ;;  %v2376_v23 = vld [vmem:[%s2655_s4 + $0x310] sm:$0xff]  ;;  %v2377_v32 = vld [vmem:[%s2655_s4 + $0x318] sm:$0xff]  ;;  %v2378_v14 = vld [vmem:[%s2655_s4 + $0x300] sm:$0xff] }
 0x18c   : > { %v889_v58 = vsub.f32 %v782_v59, %v2367_v33  ;;  %v2379_v59 = vld [vmem:[%s2655_s4 + $0x308] sm:$0xff] }
 0x18d   : > { %v1023_v55 = vsel %vm290_vm3, 0.0, %v891_v19  ;;  %1150 = vst [vmem:[%s2710_s29 + $0x2b0] sm:$0xff] %v890_v34  ;;  %1148 = vst [vmem:[%s2710_s29 + $0x2a0] sm:$0xff] %v888_v1  ;;  %v638_v48 = vpop.permute.xlu1 %637  ;;  %v636_v17 = vpop.permute.xlu0 %635 }
 0x18e   : > { %v1021_v0 = vsel %vm290_vm3, 0.0, %v889_v58  ;;  %1151 = vst [vmem:[%s2710_s29 + $0x2b8] sm:$0xff] %v1023_v55  ;;  %v721_v62 = vsel %vm675_vm2, %v3975_v18, %v638_v48  ;;  %v785_v57 = vsel %vm675_vm2, %v638_v48, %v3975_v18  ;;  %v720_v20 = vsel %vm675_vm2, %v3977_v6, %v636_v17  ;;  %v2380_v58 = vld [vmem:[%s2655_s4 + $0x330] sm:$0xff] }
 0x18f   : > { %1149 = vst [vmem:[%s2710_s29 + $0x2a8] sm:$0xff] %v1021_v0  ;;  %v784_v36 = vsel %vm675_vm2, %v636_v17, %v3977_v6  ;;  %v894_v39 = vsub.f32 %v721_v62, %v2368_v10  ;;  %v895_v51 = vsub.f32 %v785_v57, %v2369_v26  ;;  %v892_v38 = vsub.f32 %v720_v20, %v2370_v28  ;;  %v2381_v0 = vld [vmem:[%s2655_s4 + $0x338] sm:$0xff]  ;;  %v2382_v17 = vld [vmem:[%s2655_s4 + $0x320] sm:$0xff]  ;;  %v2383_v57 = vld [vmem:[%s2655_s4 + $0x328] sm:$0xff] }
 0x190   : > { %v893_v18 = vsub.f32 %v784_v36, %v2371_v12 }
 0x191   : > { %v1027_v45 = vsel %vm290_vm3, 0.0, %v895_v51  ;;  %1154 = vst [vmem:[%s2710_s29 + $0x2d0] sm:$0xff] %v894_v39  ;;  %1152 = vst [vmem:[%s2710_s29 + $0x2c0] sm:$0xff] %v892_v38  ;;  %v642_v6 = vpop.permute.xlu1 %641  ;;  %v640_v13 = vpop.permute.xlu0 %639  ;;  %v2384_v38 = vld [vmem:[%s2655_s4 + $0x350] sm:$0xff] }
 0x192   : > { %v1025_v40 = vsel %vm290_vm3, 0.0, %v893_v18  ;;  %1155 = vst [vmem:[%s2710_s29 + $0x2d8] sm:$0xff] %v1027_v45  ;;  %v723_v63 = vsel %vm675_vm2, %v3983_v22, %v642_v6  ;;  %v787_v56 = vsel %vm675_vm2, %v642_v6, %v3983_v22  ;;  %v722_v16 = vsel %vm675_vm2, %v3985_v21, %v640_v13  ;;  %v2385_v18 = vld [vmem:[%s2655_s4 + $0x358] sm:$0xff] }
 0x193   : > { %1153 = vst [vmem:[%s2710_s29 + $0x2c8] sm:$0xff] %v1025_v40  ;;  %v786_v11 = vsel %vm675_vm2, %v640_v13, %v3985_v21  ;;  %v898_v54 = vsub.f32 %v723_v63, %v2372_v5  ;;  %v899_v8 = vsub.f32 %v787_v56, %v2373_v47  ;;  %v896_v30 = vsub.f32 %v722_v16, %v2374_v4  ;;  %v2386_v40 = vld [vmem:[%s2655_s4 + $0x340] sm:$0xff]  ;;  %v2387_v13 = vld [vmem:[%s2655_s4 + $0x348] sm:$0xff]  ;;  %v2388_v4 = vld [vmem:[%s2655_s4 + $0x370] sm:$0xff] }
 0x194   : > { %v897_v22 = vsub.f32 %v786_v11, %v2375_v53  ;;  %v2389_v53 = vld [vmem:[%s2655_s4 + $0x378] sm:$0xff] }
 0x195   : > { %v1031_v50 = vsel %vm290_vm3, 0.0, %v899_v8  ;;  %1158 = vst [vmem:[%s2710_s29 + $0x2f0] sm:$0xff] %v898_v54  ;;  %1156 = vst [vmem:[%s2710_s29 + $0x2e0] sm:$0xff] %v896_v30  ;;  %v646_v21 = vpop.permute.xlu1 %645  ;;  %v644_v29 = vpop.permute.xlu0 %643  ;;  %v5017_v54 = vld [vmem:[#allocation16_spill] sm:$0xff] }
 0x196   : > { %v1029_v9 = vsel %vm290_vm3, 0.0, %v897_v22  ;;  %1159 = vst [vmem:[%s2710_s29 + $0x2f8] sm:$0xff] %v1031_v50  ;;  %v725_v41 = vsel %vm675_vm2, %v3991_v7, %v646_v21  ;;  %v789_v61 = vsel %vm675_vm2, %v646_v21, %v3991_v7  ;;  %v724_v43 = vsel %vm675_vm2, %v3993_v24, %v644_v29  ;;  %v2390_v50 = vld [vmem:[%s2655_s4 + $0x360] sm:$0xff]  ;;  %v2391_v21 = vld [vmem:[%s2655_s4 + $0x368] sm:$0xff] }
 0x197   : > { %1157 = vst [vmem:[%s2710_s29 + $0x2e8] sm:$0xff] %v1029_v9  ;;  %v788_v60 = vsel %vm675_vm2, %v644_v29, %v3993_v24  ;;  %v902_v3 = vsub.f32 %v725_v41, %v2376_v23  ;;  %v903_v25 = vsub.f32 %v789_v61, %v2377_v32  ;;  %v900_v2 = vsub.f32 %v724_v43, %v2378_v14  ;;  %v5019_v32 = vld [vmem:[#allocation18_spill] sm:$0xff] }
 0x198   : > { %v901_v7 = vsub.f32 %v788_v60, %v2379_v59  ;;  %v5018_v60 = vld [vmem:[#allocation17_spill] sm:$0xff] }
 0x199   : > { %v1035_v15 = vsel %vm290_vm3, 0.0, %v903_v25  ;;  %1162 = vst [vmem:[%s2710_s29 + $0x310] sm:$0xff] %v902_v3  ;;  %1160 = vst [vmem:[%s2710_s29 + $0x300] sm:$0xff] %v900_v2  ;;  %v650_v24 = vpop.permute.xlu1 %649  ;;  %v648_v46 = vpop.permute.xlu0 %647  ;;  %v2392_v2 = vld [vmem:[%s2655_s4 + $0x390] sm:$0xff] }
 0x19a   : > { %v1033_v34 = vsel %vm290_vm3, 0.0, %v901_v7  ;;  %1163 = vst [vmem:[%s2710_s29 + $0x318] sm:$0xff] %v1035_v15  ;;  %v727_v19 = vsel %vm675_vm2, %v3999_v52, %v650_v24  ;;  %v791_v42 = vsel %vm675_vm2, %v650_v24, %v3999_v52  ;;  %v726_v1 = vsel %vm675_vm2, %v4001_v35, %v648_v46  ;;  %v2393_v7 = vld [vmem:[%s2655_s4 + $0x398] sm:$0xff] }
 0x19b   : > { %1161 = vst [vmem:[%s2710_s29 + $0x308] sm:$0xff] %v1033_v34  ;;  %v790_v33 = vsel %vm675_vm2, %v648_v46, %v4001_v35  ;;  %v906_v55 = vsub.f32 %v727_v19, %v2380_v58  ;;  %v907_v48 = vsub.f32 %v791_v42, %v2381_v0  ;;  %v904_v62 = vsub.f32 %v726_v1, %v2382_v17  ;;  %v2394_v34 = vld [vmem:[%s2655_s4 + $0x380] sm:$0xff]  ;;  %v2395_v46 = vld [vmem:[%s2655_s4 + $0x388] sm:$0xff]  ;;  %v5020_v58 = vld [vmem:[#allocation19_spill] sm:$0xff] }
 0x19c   : > { %v905_v52 = vsub.f32 %v790_v33, %v2383_v57  ;;  %v2396_v17 = vld [vmem:[%s2655_s4 + $0x3b0] sm:$0xff]  ;;  %v2397_v57 = vld [vmem:[%s2655_s4 + $0x3b8] sm:$0xff] }
 0x19d   : > { %v1039_v20 = vsel %vm290_vm3, 0.0, %v907_v48  ;;  %1166 = vst [vmem:[%s2710_s29 + $0x330] sm:$0xff] %v906_v55  ;;  %1164 = vst [vmem:[%s2710_s29 + $0x320] sm:$0xff] %v904_v62  ;;  %v654_v35 = vpop.permute.xlu1 %653  ;;  %v652_v10 = vpop.permute.xlu0 %651 }
 0x19e   : > { %v1037_v36 = vsel %vm290_vm3, 0.0, %v905_v52  ;;  %1167 = vst [vmem:[%s2710_s29 + $0x338] sm:$0xff] %v1039_v20  ;;  %v729_v39 = vsel %vm675_vm2, %v4007_v27, %v654_v35  ;;  %v793_v26 = vsel %vm675_vm2, %v654_v35, %v4007_v27  ;;  %v728_v51 = vsel %vm675_vm2, %v4009_v37, %v652_v10  ;;  %v5021_v20 = vld [vmem:[#allocation20_spill] sm:$0xff] }
 0x19f   : > { %1165 = vst [vmem:[%s2710_s29 + $0x328] sm:$0xff] %v1037_v36  ;;  %v792_v28 = vsel %vm675_vm2, %v652_v10, %v4009_v37  ;;  %v910_v12 = vsub.f32 %v729_v39, %v2384_v38  ;;  %v911_v45 = vsub.f32 %v793_v26, %v2385_v18  ;;  %v908_v6 = vsub.f32 %v728_v51, %v2386_v40  ;;  %v2398_v10 = vld [vmem:[%s2655_s4 + $0x3a0] sm:$0xff]  ;;  %v2399_v26 = vld [vmem:[%s2655_s4 + $0x3a8] sm:$0xff] }
 0x1a0   : > { %v909_v27 = vsub.f32 %v792_v28, %v2387_v13  ;;  %v5022_v18 = vld [vmem:[#allocation21_spill] sm:$0xff]  ;;  %v2400_v13 = vld [vmem:[%s2655_s4 + $0x3d0] sm:$0xff] }
 0x1a1   : > { %v1043_v63 = vsel %vm290_vm3, 0.0, %v911_v45  ;;  %1170 = vst [vmem:[%s2710_s29 + $0x350] sm:$0xff] %v910_v12  ;;  %1168 = vst [vmem:[%s2710_s29 + $0x340] sm:$0xff] %v908_v6  ;;  %v658_v37 = vpop.permute.xlu1 %657  ;;  %v656_v16 = vpop.permute.xlu0 %655 }
 0x1a2   : > { %v1041_v56 = vsel %vm290_vm3, 0.0, %v909_v27  ;;  %1171 = vst [vmem:[%s2710_s29 + $0x358] sm:$0xff] %v1043_v63  ;;  %v731_v11 = vsel %vm675_vm2, %v4015_v44, %v658_v37  ;;  %v795_v5 = vsel %vm675_vm2, %v658_v37, %v4015_v44  ;;  %v730_v47 = vsel %vm675_vm2, %v5017_v54, %v656_v16  ;;  %v2401_v63 = vld [vmem:[%s2655_s4 + $0x3d8] sm:$0xff]  ;;  %v5023_v37 = vld [vmem:[#allocation22_spill] sm:$0xff] }
 0x1a3   : > { %1169 = vst [vmem:[%s2710_s29 + $0x348] sm:$0xff] %v1041_v56  ;;  %v794_v8 = vsel %vm675_vm2, %v656_v16, %v5017_v54  ;;  %v914_v30 = vsub.f32 %v731_v11, %v2388_v4  ;;  %v915_v22 = vsub.f32 %v795_v5, %v2389_v53  ;;  %v912_v9 = vsub.f32 %v730_v47, %v2390_v50  ;;  %v2402_v5 = vld [vmem:[%s2655_s4 + $0x3c0] sm:$0xff]  ;;  %v2403_v47 = vld [vmem:[%s2655_s4 + $0x3c8] sm:$0xff] }
 0x1a4   : > { %v913_v44 = vsub.f32 %v794_v8, %v2391_v21 }
 0x1a5   : > { %v1047_v29 = vsel %vm290_vm3, 0.0, %v915_v22  ;;  %1174 = vst [vmem:[%s2710_s29 + $0x370] sm:$0xff] %v914_v30  ;;  %1172 = vst [vmem:[%s2710_s29 + $0x360] sm:$0xff] %v912_v9  ;;  %v662_v61 = vpop.permute.xlu1 %661  ;;  %v660_v43 = vpop.permute.xlu0 %659  ;;  %v5024_v22 = vld [vmem:[#allocation23_spill] sm:$0xff] }
 0x1a6   : > { %v1045_v41 = vsel %vm290_vm3, 0.0, %v913_v44  ;;  %1175 = vst [vmem:[%s2710_s29 + $0x378] sm:$0xff] %v1047_v29  ;;  %v733_v23 = vsel %vm675_vm2, %v5018_v60, %v662_v61  ;;  %v797_v3 = vsel %vm675_vm2, %v662_v61, %v5018_v60  ;;  %v732_v25 = vsel %vm675_vm2, %v5019_v32, %v660_v43  ;;  %v2404_v44 = vld [vmem:[%s2655_s4 + $0x3f0] sm:$0xff] }
 0x1a7   : > { %1173 = vst [vmem:[%s2710_s29 + $0x368] sm:$0xff] %v1045_v41  ;;  %v796_v14 = vsel %vm675_vm2, %v660_v43, %v5019_v32  ;;  %v918_v59 = vsub.f32 %v733_v23, %v2392_v2  ;;  %v919_v15 = vsub.f32 %v797_v3, %v2393_v7  ;;  %v916_v24 = vsub.f32 %v732_v25, %v2394_v34  ;;  %v2405_v41 = vld [vmem:[%s2655_s4 + $0x3f8] sm:$0xff]  ;;  %v5025_v43 = vld [vmem:[#allocation29_spill] sm:$0xff]  ;;  %v2406_v3 = vld [vmem:[%s2655_s4 + $0x3e0] sm:$0xff] }
 0x1a8   : > { %v917_v19 = vsub.f32 %v796_v14, %v2395_v46  ;;  %v2407_v25 = vld [vmem:[%s2655_s4 + $0x3e8] sm:$0xff] }
 0x1a9   : > { %v1051_v42 = vsel %vm290_vm3, 0.0, %v919_v15  ;;  %1178 = vst [vmem:[%s2710_s29 + $0x390] sm:$0xff] %v918_v59  ;;  %1176 = vst [vmem:[%s2710_s29 + $0x380] sm:$0xff] %v916_v24  ;;  %v666_v33 = vpop.permute.xlu1 %665 }
 0x1aa   : > { %v1049_v1 = vsel %vm290_vm3, 0.0, %v917_v19  ;;  %1179 = vst [vmem:[%s2710_s29 + $0x398] sm:$0xff] %v1051_v42  ;;  %v735_v55 = vsel %vm675_vm2, %v5020_v58, %v666_v33  ;;  %v799_v0 = vsel %vm675_vm2, %v666_v33, %v5020_v58  ;;  %v664_v48 = vpop.permute.xlu0 %663 }
 0x1ab   : > { %1177 = vst [vmem:[%s2710_s29 + $0x388] sm:$0xff] %v1049_v1  ;;  %v922_v62 = vsub.f32 %v735_v55, %v2396_v17  ;;  %v923_v52 = vsub.f32 %v799_v0, %v2397_v57  ;;  %v734_v36 = vsel %vm675_vm2, %v5021_v20, %v664_v48  ;;  %v798_v35 = vsel %vm675_vm2, %v664_v48, %v5021_v20 }
 0x1ac   : > { %v920_v39 = vsub.f32 %v734_v36, %v2398_v10  ;;  %v921_v51 = vsub.f32 %v798_v35, %v2399_v26 }
 0x1ad   : > { %v1055_v28 = vsel %vm290_vm3, 0.0, %v923_v52  ;;  %1182 = vst [vmem:[%s2710_s29 + $0x3b0] sm:$0xff] %v922_v62  ;;  %v670_v38 = vpop.permute.xlu1 %669 }
 0x1ae   : > { %1183 = vst [vmem:[%s2710_s29 + $0x3b8] sm:$0xff] %v1055_v28  ;;  %v1053_v12 = vsel %vm290_vm3, 0.0, %v921_v51  ;;  %1180 = vst [vmem:[%s2710_s29 + $0x3a0] sm:$0xff] %v920_v39  ;;  %v737_v45 = vsel %vm675_vm2, %v5022_v18, %v670_v38  ;;  %v801_v40 = vsel %vm675_vm2, %v670_v38, %v5022_v18  ;;  %v668_v6 = vpop.permute.xlu0 %667 }
 0x1af   : > { %1181 = vst [vmem:[%s2710_s29 + $0x3a8] sm:$0xff] %v1053_v12  ;;  %v926_v27 = vsub.f32 %v737_v45, %v2400_v13  ;;  %v927_v56 = vsub.f32 %v801_v40, %v2401_v63  ;;  %v736_v16 = vsel %vm675_vm2, %v5023_v37, %v668_v6  ;;  %v800_v11 = vsel %vm675_vm2, %v668_v6, %v5023_v37 }
 0x1b0   : > { %v924_v54 = vsub.f32 %v736_v16, %v2402_v5  ;;  %v925_v8 = vsub.f32 %v800_v11, %v2403_v47 }
 0x1b1   : > { %v1059_v4 = vsel %vm290_vm3, 0.0, %v927_v56  ;;  %1186 = vst [vmem:[%s2710_s29 + $0x3d0] sm:$0xff] %v926_v27 }
 0x1b2   : > { %v674_v30 = vpop.permute.xlu1 %673  ;;  %1187 = vst [vmem:[%s2710_s29 + $0x3d8] sm:$0xff] %v1059_v4  ;;  %v1057_v53 = vsel %vm290_vm3, 0.0, %v925_v8  ;;  %1184 = vst [vmem:[%s2710_s29 + $0x3c0] sm:$0xff] %v924_v54  ;;  %v672_v21 = vpop.permute.xlu0 %671 }
 0x1b3   : > { %v739_v50 = vsel %vm675_vm2, %v5024_v22, %v674_v30  ;;  %v803_v9 = vsel %vm675_vm2, %v674_v30, %v5024_v22  ;;  %1185 = vst [vmem:[%s2710_s29 + $0x3c8] sm:$0xff] %v1057_v53  ;;  %v738_v60 = vsel %vm675_vm2, %v5025_v43, %v672_v21  ;;  %v802_v23 = vsel %vm675_vm2, %v672_v21, %v5025_v43 }
 0x1b4   : > { %v930_v29 = vsub.f32 %v739_v50, %v2404_v44  ;;  %v931_v61 = vsub.f32 %v803_v9, %v2405_v41  ;;  %v928_v32 = vsub.f32 %v738_v60, %v2406_v3  ;;  %v929_v14 = vsub.f32 %v802_v23, %v2407_v25 }
 0x1b6   : > { %v1063_v2 = vsel %vm290_vm3, 0.0, %v931_v61  ;;  %1190 = vst [vmem:[%s2710_s29 + $0x3f0] sm:$0xff] %v930_v29  ;;  %v1061_v49 = vsel %vm290_vm3, 0.0, %v929_v14  ;;  %1188 = vst [vmem:[%s2710_s29 + $0x3e0] sm:$0xff] %v928_v32 }
 0x1b7   : > { %1191 = vst [vmem:[%s2710_s29 + $0x3f8] sm:$0xff] %v1063_v2  ;;  %1189 = vst [vmem:[%s2710_s29 + $0x3e8] sm:$0xff] %v1061_v49 }
 0x1b8   : > { %2451 = shalt.err (!%p2448_p5)
}
 0x1b9   : > { %s2452_s23 = scalar_lea.hbm %s4840_s12, 32768  ;;  %s2456_s28 = scalar_lea.hbm %s4900_s1, 65536 }
 0x1ba   : > { %p2453_p4 = scmp.ne.s32.totalorder %s4840_s12, %s2452_s23  ;;  %p2457_p12 = scmp.lt.u32.totalorder %s4840_s12, %s4900_s1 }
 0x1bb   : > { %p2458_p1 = scmp.lt.u32.totalorder %s2456_s28, %s2452_s23  ;;  %p2460_p8 = scmp.lt.u32.totalorder %s2452_s23, %s4840_s12 }
 0x1bc   : > { %p2454_p7 = pnand %p2453_p4, %p5026_p9 }
 0x1bd   : > { %p2459_p3 = por %p2458_p1, %p2457_p12 }
 0x1be   : > { %p2455_p10 = pneg %p2454_p7 }
 0x1bf   : > { %p2461_p11 = por %p2460_p8, %p2459_p3 }
 0x1c1   : > { %p2462_p0 = pnand %p2461_p11, %p2455_p10 }
 0x1c3   : > { %2465 = shalt.err (!%p2462_p0)
}
 0x1c4   : > { %s2527_s18 = smov 256   ;;  %s2528_s27 = smov 16  }
 0x1c5   : > { %2216 = dma.vmem_to_hbm [thread:$0]  (%p5026_p9), %s4842_s2, 32768, %s4840_s12, %s1963_s13, %s2527_s18, %s2527_s18, %s2528_s27  }
 0x1c6 PF: > { %s1995_s29 = sand.u32 1, %s2500_s6   ;;  %p5027_p6 = scmp.ne.s32.totalorder %s4945_s21, 0 }
 0x1c7   : > { %p5028_p13 = scmp.ge.s32.totalorder %s2520_s11, 2  ;;  %s1996_s30 = scalar_lea.sflag [#allocation4], %s1995_s29 }
 0x1c9   : > { %p2223_p2 = pnand %p5028_p13, %p5027_p6 }
 0x1cb   : > { %2495 = dma.done.wait (!%p2223_p2), %s1996_s30, 32768  }
 0x1cc   : > { %2497 = vsyncadd (!%p2223_p2), %s1996_s30, 4294934528  ;;  %s17_s11 = sadd.s32 1, %s2520_s11   ;;  %s5029_s6 = smov %s2504_s7 }
 0x1cd   : > { %p14_p5 = scmp.ge.s32.totalorder %s17_s11, 4   ;;  %s5030_s7 = smov %s2508_s8 }
 0x1ce   : > { %s5031_s8 = smov %s2595_s20  ;;  %s5032_s9 = smov %s2516_s10 }
 0x1cf   : > { %s5033_s10 = smov %s5035_s14  ;;  %16 = sbr.rel (!%p14_p5) target bundleno = 6 (0x6), region = 70 }
 0x1d6   :  { %2001 = vsyncpa [#allocation3], 1 }
 0x1d7   :  { %2003 = vsyncpa [#allocation3 + $0x1], 1 }
 0x1d8   :  { %2004 = vsyncpa [#allocation4], 1 }
 0x1d9   :  { %2006 = vsyncpa [#allocation4 + $0x1], 1 }

</bundles_post_ra>
